<compile_context>
chip_gen: v7x
topology: tpu7x:2x2x1
jax: 0.10.0
libtpu: 0.0.40
codegen_flags: <defaults>
</compile_context>

<pallas_src>
import functools

import jax
import jax.numpy as jnp
from jax import lax
from jax.experimental import pallas as pl
from jax.experimental.pallas import tpu as pltpu


def _fold_bn(gamma, beta, mean, var, eps=1e-5):
    scale = gamma / jnp.sqrt(var + eps)
    return scale, beta - mean * scale


def _band_conv_weight(w_oihw, width):
    """PyTorch (Cout, Cin, 3, 3) conv weight -> banded matmul weights.

    Returns B with shape (3, width*Cin, width*Cout) such that, for an image row
    flattened as (width*Cin,) (channels fastest), the 'same'-padded 1x3 conv along W
    for a fixed kh is `row @ B[kh]` (channels fastest on the output too).  Zero columns
    of B implement the W zero-padding.
    """
    Co, Ci, KH, KW = w_oihw.shape
    w = jnp.transpose(w_oihw, (2, 3, 1, 0)).astype(jnp.float32)      # (KH, KW, Ci, Co)
    cols = jnp.arange(width)
    B = jnp.zeros((KH, width * Ci, width * Co), jnp.float32)
    for kw in range(KW):
        src = cols + kw - (KW // 2)                     # input col feeding output col
        valid = ((src >= 0) & (src < width)).astype(jnp.float32)
        ind = jnp.zeros((width, width), jnp.float32).at[
            jnp.clip(src, 0, width - 1), cols].add(valid)            # ind[p, w_out]
        contrib = jnp.einsum("pw,kio->kpiwo", ind, w[:, kw])         # (KH,W,Ci,W,Co)
        B = B + contrib.reshape(KH, width * Ci, width * Co)
    return B


def _pool_perm(width, cout):
    """Lane permutation: even-w output columns first, odd-w second (channels fastest)."""
    order_w = jnp.concatenate([jnp.arange(0, width, 2), jnp.arange(1, width, 2)])
    return (order_w[:, None] * cout + jnp.arange(cout)[None, :]).reshape(-1)


def _pick_nb(N, P, Ho, max_rows=512):
    """Largest image count per grid step (divides N, keeps the stacked slab modest)."""
    best = None
    for d in range(1, N + 1):
        if N % d or d * P > max_rows:
            continue
        if N // d > 1 and ((d * P) % 8 or (d * Ho) % 8):
            continue                      # multi-step grids need sublane-aligned blocks
        best = d
    return best if best is not None else N   # fall back: whole batch in one step


def _make_kernel(Nb, P, H):
    M1 = Nb * P - 2          # conv1 output rows in the stacked slab
    M2 = M1 - 2              # conv2 output rows
    Ho = H // 2

    def kernel(x_ref, b1_ref, b2_ref, p_ref, o_ref, zc_ref):
        f32 = jnp.float32

        # ---- conv1 (3x3, pad=1, no bias): 3 banded dots over row shifts 0/1/2 ----
        acc1 = jnp.dot(x_ref[0:M1, :], b1_ref[0], preferred_element_type=f32)
        acc1 += jnp.dot(x_ref[1:M1 + 1, :], b1_ref[1], preferred_element_type=f32)
        acc1 += jnp.dot(x_ref[2:M1 + 2, :], b1_ref[2], preferred_element_type=f32)
        y1 = acc1 * p_ref[0:1, :] + p_ref[1:2, :]                    # folded BN1
        # ELU (exp-1 form: exp has a direct EUP lowering; min() keeps the dead branch safe)
        y1 = jnp.where(y1 > 0, y1, jnp.exp(jnp.minimum(y1, 0.0)) - 1.0)
        # Rows that live in the inter-image zero padding must be exactly zero: they act
        # as conv2's "same" H-padding and isolate images.  Slab row r holds image r//P,
        # image-row (r % P) - 1; valid image rows are [0, H).
        r = lax.broadcasted_iota(jnp.int32, (M1, 1), 0)
        valid = jnp.logical_and(r >= 1, r <= H)
        for i in range(1, Nb):            # static, small; avoids vector int mod
            valid = jnp.logical_or(
                valid, jnp.logical_and(r >= i * P + 1, r <= i * P + H))
        a1 = jnp.where(valid, y1, 0.0).astype(b2_ref.dtype)          # never touches HBM

        # ---- conv2 + BN2 + ELU ----
        acc2 = jnp.dot(a1[0:M2, :], b2_ref[0], preferred_element_type=f32)
        acc2 += jnp.dot(a1[1:M2 + 1, :], b2_ref[1], preferred_element_type=f32)
        acc2 += jnp.dot(a1[2:M2 + 2, :], b2_ref[2], preferred_element_type=f32)
        y2 = acc2 * p_ref[2:3, :] + p_ref[3:4, :]                    # folded BN2 (permuted)
        y2 = jnp.where(y2 > 0, y2, jnp.exp(jnp.minimum(y2, 0.0)) - 1.0)

        # ---- MaxPool2d(2) ----
        # W-pool: b2's output columns were pre-permuted (even-w | odd-w), so this is a
        # max of two lane-contiguous halves and lands directly in (wo, c) lane order.
        half = y2.shape[1] // 2
        zc_ref[...] = jnp.maximum(y2[:, :half], y2[:, half:])        # (M2, Wo*Cout)
        # H-pool + drop the 2 junk rows per image block: stride-2 sublane reads.
        for i in range(Nb):                                          # static, small
            ev = zc_ref[pl.ds(i * P, Ho, stride=2), :]
            od = zc_ref[pl.ds(i * P + 1, Ho, stride=2), :]
            o_ref[i * Ho:(i + 1) * Ho, :] = jnp.maximum(ev, od).astype(o_ref.dtype)

    return kernel


@functools.partial(jax.jit, static_argnames=("nb_images", "use_bf16"))
def unet2d_encoder_block(x_nchw, params, nb_images=None, use_bf16=True):
    """PyTorch-convention input (N, Cin, H, W) -> (N, Cout, H//2, W//2). Eval mode."""
    N, Cin, H, W = x_nchw.shape
    Cout, Cin_w, KH, KW = params["conv1_w"].shape
    assert (KH, KW) == (3, 3) and Cin_w == Cin
    assert H % 2 == 0 and W % 2 == 0
    Ho, Wo = H // 2, W // 2
    P = H + 4
    WCin, WCo = W * Cin, W * Cout
    half = Wo * Cout

    Nb = _pick_nb(N, P, Ho) if nb_images is None else nb_images
    assert N % Nb == 0
    Ngrp = N // Nb
    if Ngrp > 1:
        assert (Nb * P) % 8 == 0 and (Nb * Ho) % 8 == 0, "pick Nb with sublane-aligned blocks"

    cdt = jnp.bfloat16 if use_bf16 else jnp.float32

    # NCHW -> NHWC, pad H by 2 zero rows per side, flatten (W, Cin) onto the lane axis,
    # and stack all images' rows: (N*(H+4), W*Cin).
    x = jnp.transpose(x_nchw, (0, 2, 3, 1)).astype(jnp.float32)
    xf = jnp.pad(x, ((0, 0), (2, 2), (0, 0), (0, 0))).reshape(N * P, WCin).astype(cdt)

    # Banded conv weights (W 'same' padding folded in as zero columns); conv2's output
    # columns + BN2 params pre-permuted for the fused W-pool.
    b1 = _band_conv_weight(params["conv1_w"], W)                     # (3, W*Cin,  W*Cout)
    b2 = _band_conv_weight(params["conv2_w"], W)                     # (3, W*Cout, W*Cout)
    perm = _pool_perm(W, Cout)
    b2 = b2[:, :, perm]
    s1, t1 = _fold_bn(params["bn1_g"], params["bn1_b"], params["bn1_m"], params["bn1_v"])
    s2, t2 = _fold_bn(params["bn2_g"], params["bn2_b"], params["bn2_m"], params["bn2_v"])
    p = jnp.stack([jnp.tile(s1, W), jnp.tile(t1, W),
                   jnp.tile(s2, W)[perm], jnp.tile(t2, W)[perm]]).astype(jnp.float32)
    b1 = b1.astype(cdt)
    b2 = b2.astype(cdt)

    bpe = 2 if use_bf16 else 4
    blocks = (Nb * P * WCin * bpe            # image slab
              + 3 * WCin * WCo * bpe         # b1
              + 3 * WCo * WCo * bpe          # b2
              + 4 * WCo * 4                  # folded BN params
              + Nb * Ho * half * 4           # output block
              + (Nb * P - 4) * half * 4)     # pool scratch
    vmem_limit = int(min(max(3 * blocks + (4 << 20), 16 << 20), 48 << 20))

    kernel = _make_kernel(Nb, P, H)
    out = pl.pallas_call(
        kernel,
        out_shape=jax.ShapeDtypeStruct((N * Ho, half), jnp.float32),
        grid=(Ngrp,),
        in_specs=[
            # Nb stacked, padded images per grid step.
            pl.BlockSpec((Nb * P, WCin), lambda n: (n, 0)),
            # Banded conv weights + folded BN params: constant block index -> fetched once.
            pl.BlockSpec((3, WCin, WCo), lambda n: (0, 0, 0)),
            pl.BlockSpec((3, WCo, WCo), lambda n: (0, 0, 0)),
            pl.BlockSpec((4, WCo), lambda n: (0, 0)),
        ],
        out_specs=pl.BlockSpec((Nb * Ho, half), lambda n: (n, 0)),
        scratch_shapes=[pltpu.VMEM((Nb * P - 4, half), jnp.float32)],
        compiler_params=pltpu.CompilerParams(
            dimension_semantics=("parallel",),
            vmem_limit_bytes=vmem_limit),
    )(xf, b1, b2, p)

    out = out.reshape(N, Ho, Wo, Cout)
    # NCHW to match the PyTorch module; drop this transpose if the consumer takes NHWC.
    return jnp.transpose(out, (0, 3, 1, 2))


def reference_forward(x_nchw, params, quantize_like_kernel=False):
    """Pure-JAX/XLA reference of the same (eval-mode) forward pass."""
    if quantize_like_kernel:
        cast = lambda a: a.astype(jnp.bfloat16).astype(jnp.float32)
    else:
        cast = lambda a: a
    x = cast(jnp.transpose(x_nchw, (0, 2, 3, 1)).astype(jnp.float32))
    w1 = cast(jnp.transpose(params["conv1_w"], (2, 3, 1, 0)).astype(jnp.float32))
    w2 = cast(jnp.transpose(params["conv2_w"], (2, 3, 1, 0)).astype(jnp.float32))
    s1, t1 = _fold_bn(params["bn1_g"], params["bn1_b"], params["bn1_m"], params["bn1_v"])
    s2, t2 = _fold_bn(params["bn2_g"], params["bn2_b"], params["bn2_m"], params["bn2_v"])
    dn = ("NHWC", "HWIO", "NHWC")
    hi = lax.Precision.HIGHEST
    y = lax.conv_general_dilated(x, w1, (1, 1), "SAME", dimension_numbers=dn, precision=hi)
    y = y * s1 + t1
    y = jnp.where(y > 0, y, jnp.expm1(jnp.minimum(y, 0.0)))
    if quantize_like_kernel:
        y = cast(y)
    y = lax.conv_general_dilated(y, w2, (1, 1), "SAME", dimension_numbers=dn, precision=hi)
    y = y * s2 + t2
    y = jnp.where(y > 0, y, jnp.expm1(jnp.minimum(y, 0.0)))
    y = lax.reduce_window(y, -jnp.inf, lax.max, (1, 2, 2, 1), (1, 2, 2, 1), "VALID")
    return jnp.transpose(y, (0, 3, 1, 2))


if __name__ == "__main__":
    N, Cin, Cout, H, W = 2, 4, 16, 16, 16

    key = jax.random.PRNGKey(0)
    k = jax.random.split(key, 11)
    params = {
        # nn.Conv2d(in, out, 3, padding=1, bias=False) -> weight (Cout, Cin, 3, 3)
        "conv1_w": 0.15 * jax.random.normal(k[0], (Cout, Cin, 3, 3), jnp.float32),
        "bn1_g":   jax.random.uniform(k[1], (Cout,), jnp.float32, 0.5, 1.5),
        "bn1_b":   0.1 * jax.random.normal(k[2], (Cout,), jnp.float32),
        "bn1_m":   0.1 * jax.random.normal(k[3], (Cout,), jnp.float32),
        "bn1_v":   jax.random.uniform(k[4], (Cout,), jnp.float32, 0.5, 1.5),
        "conv2_w": 0.15 * jax.random.normal(k[5], (Cout, Cout, 3, 3), jnp.float32),
        "bn2_g":   jax.random.uniform(k[6], (Cout,), jnp.float32, 0.5, 1.5),
        "bn2_b":   0.1 * jax.random.normal(k[7], (Cout,), jnp.float32),
        "bn2_m":   0.1 * jax.random.normal(k[8], (Cout,), jnp.float32),
        "bn2_v":   jax.random.uniform(k[9], (Cout,), jnp.float32, 0.5, 1.5),
    }
    # PyTorch-convention input: NCHW
    x = jax.random.normal(k[10], (N, Cin, H, W), jnp.float32)

    out = jax.block_until_ready(unet2d_encoder_block(x, params))   # bf16 MXU path
    assert out.shape == (N, Cout, H // 2, W // 2), out.shape

    # Reference with the same bf16 rounding of inputs/weights/activation (the kernel
    # accumulates and runs the epilogue in f32), isolating kernel-math correctness.
    ref = reference_forward(x, params, quantize_like_kernel=True)
    max_err = float(jnp.max(jnp.abs(out - ref)))
    assert jnp.allclose(out, ref, atol=1e-2, rtol=1e-2), f"max abs err = {max_err}"

    print("KERNEL_OK")
</pallas_src>

<mosaic_0001>
module attributes {stable_mosaic.version = 11 : i64} {
  func.func private @main(%arg0: i32) attributes {dimension_semantics = [#tpu.dimension_semantics<core_parallel>], iteration_bounds = array<i64: 2>, tpu.core_type = #tpu.core_type<sc_scalar_subcore>, window_params = []} {
    return
  }
}

module attributes {stable_mosaic.version = 11 : i64} {
  func.func private @main(%arg0: i32) attributes {dimension_semantics = [#tpu.dimension_semantics<core_parallel>], iteration_bounds = array<i64: 2>, tpu.core_type = #tpu.core_type<sc_scalar_subcore>, window_params = []} {
    return
  }
}

module attributes {stable_mosaic.version = 11 : i64} {
  func.func @kernel(%arg0: i32, %arg1: memref<40x64xbf16, #tpu.memory_space<vmem>>, %arg2: memref<3x64x256xbf16, #tpu.memory_space<vmem>>, %arg3: memref<3x256x256xbf16, #tpu.memory_space<vmem>>, %arg4: memref<4x256xf32, #tpu.memory_space<vmem>>, %arg5: memref<16x128xf32, #tpu.memory_space<vmem>>, %arg6: memref<36x128xf32, #tpu.memory_space<vmem>>) attributes {dimension_semantics = [#tpu.dimension_semantics<parallel>], iteration_bounds = array<i64: 1>, scalar_prefetch = 0 : i64, scratch_operands = 1 : i64, tpu.core_type = #tpu.core_type<tc>, window_params = [{transform_indices = @transform_0, window_bounds = array<i64: 40, 64>}, {pipeline_mode = #tpu.pipeline_mode<synchronous>, transform_indices = @transform_1, window_bounds = array<i64: 3, 64, 256>}, {pipeline_mode = #tpu.pipeline_mode<synchronous>, transform_indices = @transform_2, window_bounds = array<i64: 3, 256, 256>}, {pipeline_mode = #tpu.pipeline_mode<synchronous>, transform_indices = @transform_3, window_bounds = array<i64: 4, 256>}, {transform_indices = @transform_4, window_bounds = array<i64: 16, 128>}]} {
    %c0 = arith.constant 0 : index
    %c0_0 = arith.constant 0 : index
    %0 = vector.load %arg1[%c0, %c0_0] : memref<40x64xbf16, #tpu.memory_space<vmem>>, vector<38x64xbf16>
    %c0_1 = arith.constant 0 : index
    %c0_2 = arith.constant 0 : index
    %c0_3 = arith.constant 0 : index
    %1 = vector.load %arg2[%c0_1, %c0_2, %c0_3] : memref<3x64x256xbf16, #tpu.memory_space<vmem>>, vector<1x64x256xbf16>
    %2 = vector.shape_cast %1 : vector<1x64x256xbf16> to vector<64x256xbf16>
    %cst = arith.constant dense<0.000000e+00> : vector<38x256xf32>
    %3 = tpu.matmul %0, %2, %cst {dimension_numbers = #tpu.dot_dimension_numbers<[1], [0], [0], [1], [0, 0, 1, 1], [], []>} : vector<38x64xbf16>, vector<64x256xbf16>, vector<38x256xf32> -> vector<38x256xf32>
    %c1 = arith.constant 1 : index
    %c0_4 = arith.constant 0 : index
    %4 = vector.load %arg1[%c1, %c0_4] : memref<40x64xbf16, #tpu.memory_space<vmem>>, vector<38x64xbf16>
    %c1_5 = arith.constant 1 : index
    %c0_6 = arith.constant 0 : index
    %c0_7 = arith.constant 0 : index
    %5 = vector.load %arg2[%c1_5, %c0_6, %c0_7] : memref<3x64x256xbf16, #tpu.memory_space<vmem>>, vector<1x64x256xbf16>
    %6 = vector.shape_cast %5 : vector<1x64x256xbf16> to vector<64x256xbf16>
    %cst_8 = arith.constant dense<0.000000e+00> : vector<38x256xf32>
    %7 = tpu.matmul %4, %6, %cst_8 {dimension_numbers = #tpu.dot_dimension_numbers<[1], [0], [0], [1], [0, 0, 1, 1], [], []>} : vector<38x64xbf16>, vector<64x256xbf16>, vector<38x256xf32> -> vector<38x256xf32>
    %8 = arith.addf %3, %7 : vector<38x256xf32>
    %c2 = arith.constant 2 : index
    %c0_9 = arith.constant 0 : index
    %9 = vector.load %arg1[%c2, %c0_9] : memref<40x64xbf16, #tpu.memory_space<vmem>>, vector<38x64xbf16>
    %c2_10 = arith.constant 2 : index
    %c0_11 = arith.constant 0 : index
    %c0_12 = arith.constant 0 : index
    %10 = vector.load %arg2[%c2_10, %c0_11, %c0_12] : memref<3x64x256xbf16, #tpu.memory_space<vmem>>, vector<1x64x256xbf16>
    %11 = vector.shape_cast %10 : vector<1x64x256xbf16> to vector<64x256xbf16>
    %cst_13 = arith.constant dense<0.000000e+00> : vector<38x256xf32>
    %12 = tpu.matmul %9, %11, %cst_13 {dimension_numbers = #tpu.dot_dimension_numbers<[1], [0], [0], [1], [0, 0, 1, 1], [], []>} : vector<38x64xbf16>, vector<64x256xbf16>, vector<38x256xf32> -> vector<38x256xf32>
    %13 = arith.addf %8, %12 : vector<38x256xf32>
    %c0_14 = arith.constant 0 : index
    %c0_15 = arith.constant 0 : index
    %14 = vector.load %arg4[%c0_14, %c0_15] : memref<4x256xf32, #tpu.memory_space<vmem>>, vector<1x256xf32>
    %15 = vector.broadcast %14 : vector<1x256xf32> to vector<38x256xf32>
    %16 = arith.mulf %13, %15 : vector<38x256xf32>
    %c1_16 = arith.constant 1 : index
    %c0_17 = arith.constant 0 : index
    %17 = vector.load %arg4[%c1_16, %c0_17] : memref<4x256xf32, #tpu.memory_space<vmem>>, vector<1x256xf32>
    %18 = vector.broadcast %17 : vector<1x256xf32> to vector<38x256xf32>
    %19 = arith.addf %16, %18 : vector<38x256xf32>
    %cst_18 = arith.constant 0.000000e+00 : f32
    %20 = vector.broadcast %cst_18 : f32 to vector<38x256xf32>
    %21 = arith.cmpf ogt, %19, %20 : vector<38x256xf32>
    %cst_19 = arith.constant 0.000000e+00 : f32
    %22 = vector.broadcast %cst_19 : f32 to vector<38x256xf32>
    %23 = arith.minimumf %19, %22 : vector<38x256xf32>
    %24 = math.exp %23 : vector<38x256xf32>
    %cst_20 = arith.constant 1.000000e+00 : f32
    %25 = vector.broadcast %cst_20 : f32 to vector<38x256xf32>
    %26 = arith.subf %24, %25 : vector<38x256xf32>
    %27 = arith.select %21, %19, %26 : vector<38x256xi1>, vector<38x256xf32>
    %28 = tpu.iota {dimensions = array<i32: 0>} : vector<38x1xi32>
    %c1_i32 = arith.constant 1 : i32
    %29 = vector.broadcast %c1_i32 : i32 to vector<38x1xi32>
    %30 = arith.cmpi sge, %28, %29 : vector<38x1xi32>
    %c16_i32 = arith.constant 16 : i32
    %31 = vector.broadcast %c16_i32 : i32 to vector<38x1xi32>
    %32 = arith.cmpi sle, %28, %31 : vector<38x1xi32>
    %33 = arith.andi %30, %32 : vector<38x1xi1>
    %c21_i32 = arith.constant 21 : i32
    %34 = vector.broadcast %c21_i32 : i32 to vector<38x1xi32>
    %35 = arith.cmpi sge, %28, %34 : vector<38x1xi32>
    %c36_i32 = arith.constant 36 : i32
    %36 = vector.broadcast %c36_i32 : i32 to vector<38x1xi32>
    %37 = arith.cmpi sle, %28, %36 : vector<38x1xi32>
    %38 = arith.andi %35, %37 : vector<38x1xi1>
    %39 = arith.ori %33, %38 : vector<38x1xi1>
    %cst_21 = arith.constant 0.000000e+00 : f32
    %40 = vector.shape_cast %39 : vector<38x1xi1> to vector<38x1xi1>
    %41 = vector.broadcast %40 : vector<38x1xi1> to vector<38x256xi1>
    %42 = vector.broadcast %cst_21 : f32 to vector<38x256xf32>
    %43 = arith.select %41, %27, %42 : vector<38x256xi1>, vector<38x256xf32>
    %44 = arith.truncf %43 : vector<38x256xf32> to vector<38x256xbf16>
    %45 = vector.extract_strided_slice %44 {offsets = [0, 0], sizes = [36, 256], strides = [1, 1]} : vector<38x256xbf16> to vector<36x256xbf16>
    %c0_22 = arith.constant 0 : index
    %c0_23 = arith.constant 0 : index
    %c0_24 = arith.constant 0 : index
    %46 = vector.load %arg3[%c0_22, %c0_23, %c0_24] : memref<3x256x256xbf16, #tpu.memory_space<vmem>>, vector<1x256x256xbf16>
    %47 = vector.shape_cast %46 : vector<1x256x256xbf16> to vector<256x256xbf16>
    %cst_25 = arith.constant dense<0.000000e+00> : vector<36x256xf32>
    %48 = tpu.matmul %45, %47, %cst_25 {dimension_numbers = #tpu.dot_dimension_numbers<[1], [0], [0], [1], [0, 0, 1, 1], [], []>} : vector<36x256xbf16>, vector<256x256xbf16>, vector<36x256xf32> -> vector<36x256xf32>
    %49 = vector.extract_strided_slice %44 {offsets = [1, 0], sizes = [36, 256], strides = [1, 1]} : vector<38x256xbf16> to vector<36x256xbf16>
    %c1_26 = arith.constant 1 : index
    %c0_27 = arith.constant 0 : index
    %c0_28 = arith.constant 0 : index
    %50 = vector.load %arg3[%c1_26, %c0_27, %c0_28] : memref<3x256x256xbf16, #tpu.memory_space<vmem>>, vector<1x256x256xbf16>
    %51 = vector.shape_cast %50 : vector<1x256x256xbf16> to vector<256x256xbf16>
    %cst_29 = arith.constant dense<0.000000e+00> : vector<36x256xf32>
    %52 = tpu.matmul %49, %51, %cst_29 {dimension_numbers = #tpu.dot_dimension_numbers<[1], [0], [0], [1], [0, 0, 1, 1], [], []>} : vector<36x256xbf16>, vector<256x256xbf16>, vector<36x256xf32> -> vector<36x256xf32>
    %53 = arith.addf %48, %52 : vector<36x256xf32>
    %54 = vector.extract_strided_slice %44 {offsets = [2, 0], sizes = [36, 256], strides = [1, 1]} : vector<38x256xbf16> to vector<36x256xbf16>
    %c2_30 = arith.constant 2 : index
    %c0_31 = arith.constant 0 : index
    %c0_32 = arith.constant 0 : index
    %55 = vector.load %arg3[%c2_30, %c0_31, %c0_32] : memref<3x256x256xbf16, #tpu.memory_space<vmem>>, vector<1x256x256xbf16>
    %56 = vector.shape_cast %55 : vector<1x256x256xbf16> to vector<256x256xbf16>
    %cst_33 = arith.constant dense<0.000000e+00> : vector<36x256xf32>
    %57 = tpu.matmul %54, %56, %cst_33 {dimension_numbers = #tpu.dot_dimension_numbers<[1], [0], [0], [1], [0, 0, 1, 1], [], []>} : vector<36x256xbf16>, vector<256x256xbf16>, vector<36x256xf32> -> vector<36x256xf32>
    %58 = arith.addf %53, %57 : vector<36x256xf32>
    %c2_34 = arith.constant 2 : index
    %c0_35 = arith.constant 0 : index
    %59 = vector.load %arg4[%c2_34, %c0_35] : memref<4x256xf32, #tpu.memory_space<vmem>>, vector<1x256xf32>
    %60 = vector.broadcast %59 : vector<1x256xf32> to vector<36x256xf32>
    %61 = arith.mulf %58, %60 : vector<36x256xf32>
    %c3 = arith.constant 3 : index
    %c0_36 = arith.constant 0 : index
    %62 = vector.load %arg4[%c3, %c0_36] : memref<4x256xf32, #tpu.memory_space<vmem>>, vector<1x256xf32>
    %63 = vector.broadcast %62 : vector<1x256xf32> to vector<36x256xf32>
    %64 = arith.addf %61, %63 : vector<36x256xf32>
    %cst_37 = arith.constant 0.000000e+00 : f32
    %65 = vector.broadcast %cst_37 : f32 to vector<36x256xf32>
    %66 = arith.cmpf ogt, %64, %65 : vector<36x256xf32>
    %cst_38 = arith.constant 0.000000e+00 : f32
    %67 = vector.broadcast %cst_38 : f32 to vector<36x256xf32>
    %68 = arith.minimumf %64, %67 : vector<36x256xf32>
    %69 = math.exp %68 : vector<36x256xf32>
    %cst_39 = arith.constant 1.000000e+00 : f32
    %70 = vector.broadcast %cst_39 : f32 to vector<36x256xf32>
    %71 = arith.subf %69, %70 : vector<36x256xf32>
    %72 = arith.select %66, %64, %71 : vector<36x256xi1>, vector<36x256xf32>
    %73 = vector.extract_strided_slice %72 {offsets = [0, 0], sizes = [36, 128], strides = [1, 1]} : vector<36x256xf32> to vector<36x128xf32>
    %74 = vector.extract_strided_slice %72 {offsets = [0, 128], sizes = [36, 128], strides = [1, 1]} : vector<36x256xf32> to vector<36x128xf32>
    %75 = arith.maximumf %73, %74 : vector<36x128xf32>
    %c0_40 = arith.constant 0 : index
    %c0_41 = arith.constant 0 : index
    %76 = vector.load %arg6[%c0_40, %c0_41] : memref<36x128xf32, #tpu.memory_space<vmem>>, vector<36x128xf32>
    tpu.vector_store %arg6[%c0_40, %c0_41], %75 {strides = array<i32>} : memref<36x128xf32, #tpu.memory_space<vmem>>, vector<36x128xf32>,
    %c0_42 = arith.constant 0 : index
    %c0_43 = arith.constant 0 : index
    %77 = tpu.strided_load %arg6[%c0_42, %c0_43] {strides = array<i32: 2, 1>} : memref<36x128xf32, #tpu.memory_space<vmem>>, vector<8x128xf32>
    %c1_44 = arith.constant 1 : index
    %c0_45 = arith.constant 0 : index
    %78 = tpu.strided_load %arg6[%c1_44, %c0_45] {strides = array<i32: 2, 1>} : memref<36x128xf32, #tpu.memory_space<vmem>>, vector<8x128xf32>
    %79 = arith.maximumf %77, %78 : vector<8x128xf32>
    %c0_46 = arith.constant 0 : index
    %c0_47 = arith.constant 0 : index
    %80 = vector.load %arg5[%c0_46, %c0_47] : memref<16x128xf32, #tpu.memory_space<vmem>>, vector<8x128xf32>
    tpu.vector_store %arg5[%c0_46, %c0_47], %79 {strides = array<i32>} : memref<16x128xf32, #tpu.memory_space<vmem>>, vector<8x128xf32>,
    %c20 = arith.constant 20 : index
    %c0_48 = arith.constant 0 : index
    %81 = tpu.strided_load %arg6[%c20, %c0_48] {strides = array<i32: 2, 1>} : memref<36x128xf32, #tpu.memory_space<vmem>>, vector<8x128xf32>
    %c21 = arith.constant 21 : index
    %c0_49 = arith.constant 0 : index
    %82 = tpu.strided_load %arg6[%c21, %c0_49] {strides = array<i32: 2, 1>} : memref<36x128xf32, #tpu.memory_space<vmem>>, vector<8x128xf32>
    %83 = arith.maximumf %81, %82 : vector<8x128xf32>
    %c8 = arith.constant 8 : index
    %c0_50 = arith.constant 0 : index
    %84 = vector.load %arg5[%c8, %c0_50] : memref<16x128xf32, #tpu.memory_space<vmem>>, vector<8x128xf32>
    tpu.vector_store %arg5[%c8, %c0_50], %83 {strides = array<i32>} : memref<16x128xf32, #tpu.memory_space<vmem>>, vector<8x128xf32>,
    return
  }
  func.func @transform_0(%arg0: i32) -> (i32, i32) {
    %c0_i32 = arith.constant 0 : i32
    %c0_i32_0 = arith.constant 0 : i32
    return %arg0, %c0_i32 : i32, i32
  }
  func.func @transform_1(%arg0: i32) -> (i32, i32, i32) {
    %c0_i32 = arith.constant 0 : i32
    %c0_i32_0 = arith.constant 0 : i32
    %c0_i32_1 = arith.constant 0 : i32
    %c0_i32_2 = arith.constant 0 : i32
    return %c0_i32, %c0_i32_0, %c0_i32_1 : i32, i32, i32
  }
  func.func @transform_2(%arg0: i32) -> (i32, i32, i32) {
    %c0_i32 = arith.constant 0 : i32
    %c0_i32_0 = arith.constant 0 : i32
    %c0_i32_1 = arith.constant 0 : i32
    %c0_i32_2 = arith.constant 0 : i32
    return %c0_i32, %c0_i32_0, %c0_i32_1 : i32, i32, i32
  }
  func.func @transform_3(%arg0: i32) -> (i32, i32) {
    %c0_i32 = arith.constant 0 : i32
    %c0_i32_0 = arith.constant 0 : i32
    %c0_i32_1 = arith.constant 0 : i32
    return %c0_i32, %c0_i32_0 : i32, i32
  }
  func.func @transform_4(%arg0: i32) -> (i32, i32) {
    %c0_i32 = arith.constant 0 : i32
    %c0_i32_0 = arith.constant 0 : i32
    return %arg0, %c0_i32 : i32, i32
  }
}

</mosaic_0001>

<bundles_post_ra>
// kernel: tile.32
= control target key start
LH: loop header
LB: loop body
LE: loop exit
PB: predicated region body
PF: predicated region fallthrough
CT: control target
= control target key end

     0   :  { %s7_s6 = smov 3  ;;  %s21_s9 = smov 3  ;;  %vm4_vm0 = vcmask 130048   ;;  %vm11_vm1 = vcmask 1048448   ;;  %vm18_vm2 = vcmask 917248   ;;  %vm25_vm3 = vcmask 786048   ;;  %s119_s0 = inlined_call_operand.vmem [shape: f32[16,16], index: 0, kind: input, shape index: {}]   ;;  %s120_s1 = inlined_call_operand.vmem [shape: f32[256], index: 1, kind: output, shape index: {}]  }
   0x1   :  { %v61_v0 = vld [vmem:[%s119_s0 + $0x7] ss:$8 sm:%s7_s6]   ;;  %s75_s10 = smov 112   ;;  %v63_v1 = vld [vmem:[%s119_s0 + $0x5] ss:$8 sm:%s21_s9]   ;;  %s14_s13 = smov 3 }
   0x2   :  { %9 = vrot.lane.b32.xlu0 %v61_v0, %s75_s10  ;;  %s76_s14 = smov 80   ;;  %v62_v2 = vld [vmem:[%s119_s0 + $0x6] ss:$8 sm:%s14_s13]   ;;  %s28_s17 = smov 3  ;;  %vm32_vm4 = vcmask 654848   ;;  %vm39_vm5 = vcmask 523648  }
   0x3   :  { %23 = vrot.lane.b32.xlu1 %v63_v1, %s76_s14  ;;  %v64_v3 = vld [vmem:[%s119_s0 + $0x4] ss:$8 sm:%s28_s17]   ;;  %s35_s20 = smov 3  ;;  %s42_s21 = smov 3  ;;  %vm46_vm6 = vcmask 392448   ;;  %vm53_vm7 = vcmask 261248  }
   0x4   :  { %s77_s22 = smov 96   ;;  %s78_s23 = smov 64   ;;  %v65_v4 = vld [vmem:[%s119_s0 + $0x3] ss:$8 sm:%s35_s20]   ;;  %v66_v5 = vld [vmem:[%s119_s0 + $0x2] ss:$8 sm:%s42_s21]  }
   0x5   :  { %s2_s26 = smov 3  ;;  %s49_s29 = smov 3 }
   0x6   :  { %16 = vrot.lane.b32.xlu0 %v62_v2, %s77_s22  ;;  %v3_v6 = vld [vmem:[%s119_s0] ss:$8 sm:%s2_s26]   ;;  %s79_s3 = smov 48   ;;  %s80_s4 = smov 32  }
   0x7   :  { %30 = vrot.lane.b32.xlu1 %v64_v3, %s78_s23  ;;  %5 = vst.msk [vmem:[#allocation0] sm:$0x3] %vm4_vm0, %v3_v6   ;;  %v67_v7 = vld [vmem:[%s119_s0 + $0x1] ss:$8 sm:%s49_s29]   ;;  %s81_s0 = smov 16  }
   0xa   :  { %37 = vrot.lane.b32.xlu0 %v65_v4, %s79_s3 }
   0xb   :  { %44 = vrot.lane.b32.xlu1 %v66_v5, %s80_s4 }
   0xe   :  { %51 = vrot.lane.b32.xlu0 %v67_v7, %s81_s0 }
  0x74   :  { %v10_v8 = vpop.permute.xlu0 %9  }
  0x75   :  { %12 = vst.msk [vmem:[#allocation0] sm:$0x3] %vm11_vm1, %v10_v8   ;;  %v24_v9 = vpop.permute.xlu1 %23  }
  0x78   :  { %v17_v10 = vpop.permute.xlu0 %16  }
  0x79   :  { %19 = vst.msk [vmem:[#allocation0] sm:$0x3] %vm18_vm2, %v17_v10   ;;  %v31_v11 = vpop.permute.xlu1 %30  }
  0x7a   :  { %26 = vst.msk [vmem:[#allocation0] sm:$0x3] %vm25_vm3, %v24_v9  }
  0x7b   :  { %33 = vst.msk [vmem:[#allocation0] sm:$0x3] %vm32_vm4, %v31_v11  }
  0x7c   :  { %v38_v12 = vpop.permute.xlu0 %37  }
  0x7d   :  { %40 = vst.msk [vmem:[#allocation0] sm:$0x3] %vm39_vm5, %v38_v12   ;;  %v45_v13 = vpop.permute.xlu1 %44  }
  0x7e   :  { %47 = vst.msk [vmem:[#allocation0] sm:$0x3] %vm46_vm6, %v45_v13  }
  0x80   :  { %v52_v14 = vpop.permute.xlu0 %51  }
  0x81   :  { %54 = vst.msk [vmem:[#allocation0] sm:$0x3] %vm53_vm7, %v52_v14  }
  0x88   :  { %v58_v15 = vld [vmem:[#allocation0] sm:$0x3] }
  0x89   :  { %60 = vst [vmem:[%s120_s1] sm:$0x3] %v58_v15 }

// kernel: tile.31
= control target key start
LH: loop header
LB: loop body
LE: loop exit
PB: predicated region body
PF: predicated region fallthrough
CT: control target
= control target key end

     0   :  { %s28_s0 = inlined_call_operand.vmem [shape: f32[16], index: 0, kind: input, shape index: {}]   ;;  %s29_s1 = inlined_call_operand.vmem [shape: f32[16,16], index: 1, kind: output, shape index: {}]  }
   0x1   :  { %v4_v0 = vld [vmem:[%s28_s0] ss:$0 sm:$0xff] }
   0x2   :  { %5 = vst [vmem:[%s29_s1] sm:$0xff] %v4_v0  ;;  %8 = vst [vmem:[%s29_s1 + $0x8] sm:$0xff] %v4_v0 }

// kernel: tile.38
= control target key start
LH: loop header
LB: loop body
LE: loop exit
PB: predicated region body
PF: predicated region fallthrough
CT: control target
= control target key end

     0   :  { %s7_s6 = smov 3  ;;  %s21_s9 = smov 3  ;;  %vm4_vm0 = vcmask 130048   ;;  %vm11_vm1 = vcmask 1048448   ;;  %vm18_vm2 = vcmask 917248   ;;  %vm25_vm3 = vcmask 786048   ;;  %s128_s0 = inlined_call_operand.vmem [shape: f32[16,16], index: 0, kind: input, shape index: {}]   ;;  %s129_s1 = inlined_call_operand.vmem [shape: f32[1,256], index: 1, kind: output, shape index: {}]  }
   0x1   :  { %v66_v0 = vld [vmem:[%s128_s0 + $0x7] ss:$8 sm:%s7_s6]   ;;  %s81_s10 = smov 112   ;;  %v68_v1 = vld [vmem:[%s128_s0 + $0x5] ss:$8 sm:%s21_s9]   ;;  %s14_s13 = smov 3 }
   0x2   :  { %9 = vrot.lane.b32.xlu0 %v66_v0, %s81_s10  ;;  %s82_s14 = smov 80   ;;  %v67_v2 = vld [vmem:[%s128_s0 + $0x6] ss:$8 sm:%s14_s13]   ;;  %s28_s17 = smov 3  ;;  %vm32_vm4 = vcmask 654848   ;;  %vm39_vm5 = vcmask 523648  }
   0x3   :  { %23 = vrot.lane.b32.xlu1 %v68_v1, %s82_s14  ;;  %v69_v3 = vld [vmem:[%s128_s0 + $0x4] ss:$8 sm:%s28_s17]   ;;  %s35_s20 = smov 3  ;;  %s42_s21 = smov 3  ;;  %vm46_vm6 = vcmask 392448   ;;  %vm53_vm7 = vcmask 261248  }
   0x4   :  { %s83_s22 = smov 96   ;;  %s84_s23 = smov 64   ;;  %v70_v4 = vld [vmem:[%s128_s0 + $0x3] ss:$8 sm:%s35_s20]   ;;  %v71_v5 = vld [vmem:[%s128_s0 + $0x2] ss:$8 sm:%s42_s21]  }
   0x5   :  { %s2_s26 = smov 3  ;;  %s49_s29 = smov 3 }
   0x6   :  { %16 = vrot.lane.b32.xlu0 %v67_v2, %s83_s22  ;;  %v3_v6 = vld [vmem:[%s128_s0] ss:$8 sm:%s2_s26]   ;;  %s85_s3 = smov 48   ;;  %s86_s4 = smov 32  }
   0x7   :  { %30 = vrot.lane.b32.xlu1 %v69_v3, %s84_s23  ;;  %5 = vst.msk [vmem:[#allocation0] ss:$8 sm:$0x3] %vm4_vm0, %v3_v6   ;;  %v72_v7 = vld [vmem:[%s128_s0 + $0x1] ss:$8 sm:%s49_s29]   ;;  %s87_s0 = smov 16  }
   0xa   :  { %37 = vrot.lane.b32.xlu0 %v70_v4, %s85_s3 }
   0xb   :  { %44 = vrot.lane.b32.xlu1 %v71_v5, %s86_s4 }
   0xe   :  { %51 = vrot.lane.b32.xlu0 %v72_v7, %s87_s0 }
  0x74   :  { %v10_v8 = vpop.permute.xlu0 %9  }
  0x75   :  { %12 = vst.msk [vmem:[#allocation0] ss:$8 sm:$0x3] %vm11_vm1, %v10_v8   ;;  %v24_v9 = vpop.permute.xlu1 %23  }
  0x78   :  { %v17_v10 = vpop.permute.xlu0 %16  }
  0x79   :  { %19 = vst.msk [vmem:[#allocation0] ss:$8 sm:$0x3] %vm18_vm2, %v17_v10   ;;  %v31_v11 = vpop.permute.xlu1 %30  }
  0x7a   :  { %26 = vst.msk [vmem:[#allocation0] ss:$8 sm:$0x3] %vm25_vm3, %v24_v9  }
  0x7b   :  { %33 = vst.msk [vmem:[#allocation0] ss:$8 sm:$0x3] %vm32_vm4, %v31_v11  }
  0x7c   :  { %v38_v12 = vpop.permute.xlu0 %37  }
  0x7d   :  { %40 = vst.msk [vmem:[#allocation0] ss:$8 sm:$0x3] %vm39_vm5, %v38_v12   ;;  %v45_v13 = vpop.permute.xlu1 %44  }
  0x7e   :  { %47 = vst.msk [vmem:[#allocation0] ss:$8 sm:$0x3] %vm46_vm6, %v45_v13  }
  0x80   :  { %v52_v14 = vpop.permute.xlu0 %51  }
  0x81   :  { %54 = vst.msk [vmem:[#allocation0] ss:$8 sm:$0x3] %vm53_vm7, %v52_v14  }
  0x88   :  { %v58_v15 = vld [vmem:[#allocation0] sm:$0x1]  ;;  %v62_v16 = vld [vmem:[#allocation0 + $0x8] sm:$0x1] }
  0x89   :  { %60 = vst [vmem:[%s129_s1] sm:$0x1] %v58_v15  ;;  %73 = vst [vmem:[%s129_s1 + $0x1] sm:$0x1] %v62_v16 }

// kernel: unet2d_encoder_block.1
= control target key start
LH: loop header
LB: loop body
LE: loop exit
PB: predicated region body
PF: predicated region fallthrough
CT: control target
= control target key end

     0   :  { %v2115_v1 = vmov 0   ;;  %vm54_vm0 = vsmask.f32 7424  ;;  %vm118_vm1 = vcmask 523264   ;;  %vm313_vm2 = vcmask 1046528   ;;  %s2817_s1 = inlined_call_operand.vmem [shape: bf16[3,64,256], index: 1, kind: input, shape index: {}]   ;;  %s2818_s0 = inlined_call_operand.vmem [shape: bf16[40,64], index: 0, kind: input, shape index: {}]   ;;  %s2819_s2 = inlined_call_operand.vmem [shape: bf16[3,256,256], index: 2, kind: input, shape index: {}]   ;;  %s2820_s3 = inlined_call_operand.vmem [shape: f32[4,256], index: 3, kind: input, shape index: {}]   ;;  %s2821_s4 = inlined_call_operand.vmem [shape: f32[16,128], index: 4, kind: output, shape index: {}]  }
   0x1   :  { %v1890_v0 = vld [vmem:[%s2817_s1 + $0x44] ss:$8 sps:$4 sm:$0xff]   ;;  %160 = vmatprep.mubr.bf16.mxu0 %v2115_v1  ;;  %v1892_v2 = vld [vmem:[%s2817_s1 + $0x40] ss:$8 sps:$4 sm:$0xff]   ;;  %v1893_v3 = vld [vmem:[%s2817_s1 + $0x54] ss:$8 sps:$4 sm:$0xff]  }
   0x2   :  { %128 = vmatprep.subr.bf16.mxu0 %v1890_v0  ;;  %v1895_v4 = vld [vmem:[%s2817_s1 + $0x50] ss:$8 sps:$4 sm:$0xff]   ;;  %v1896_v5 = vld [vmem:[%s2817_s1 + $0x64] ss:$8 sps:$4 sm:$0xff]   ;;  %v18_v6 = vld [vmem:[%s2818_s0] sm:$0xf] }
   0x3   :  { %129 = vmatpush1.bf16.msra.mxu0 %v1892_v2  ;;  %v2164_v7 = vld [vmem:[%s2818_s0 + $0x4] sm:$0xf]  ;;  %v2172_v9 = vld [vmem:[%s2818_s0 + $0x8] sm:$0xff]   ;;  %v1899_v11 = vld [vmem:[%s2817_s1 + $0x74] ss:$8 sps:$4 sm:$0xff]   ;;  %vm2116_vm10 = vmmov 1  }
   0x4   :  { %130 = vmatprep.subr.bf16.mxu0 %v1893_v3  ;;  %v2167_v8 = vcombine.low %v18_v6, %v2164_v7  ;;  %v1898_v10 = vld [vmem:[%s2817_s1 + $0x60] ss:$8 sps:$4 sm:$0xff]   ;;  %v63_v14 = vshll.u32 %v2172_v9, 16  ;;  %v1901_v15 = vld [vmem:[%s2817_s1 + $0x70] ss:$8 sps:$4 sm:$0xff]   ;;  %v67_v23 = vshrl.u32 %v2172_v9, 16 }
   0x5   :  { %v2189_v18 = vld [vmem:[%s2818_s0 + $0x10] ss:$0 sps:$4 sm:$0xff]   ;;  %v1906_v20 = vld [vmem:[%s2817_s1 + $0x4] ss:$8 sps:$4 sm:$0xff]   ;;  %v1904_v22 = vld [vmem:[%s2817_s1] ss:$8 sps:$4 sm:$0xff]  }
   0x6   :  { %v56_v12 = vshrl.u32 %v2167_v8, 16  ;;  %v58_v13 = vshll.u32 %v2167_v8, 16  ;;  %v65_v17 = vrot.slane %v63_v14, 1  ;;  %v71_v24 = vshll.u32 %v2189_v18, 16  ;;  %v1909_v25 = vld [vmem:[%s2817_s1 + $0x14] ss:$8 sps:$4 sm:$0xff]  }
   0x7   :  { %131 = vmatpush1.bf16.msra.mxu0 %v1895_v4  ;;  %v1907_v26 = vld [vmem:[%s2817_s1 + $0x10] ss:$8 sps:$4 sm:$0xff]   ;;  %v1913_v29 = vld [vmem:[%s2817_s1 + $0x24] ss:$8 sps:$4 sm:$0xff]   ;;  %v1933_v31 = vld [vmem:[%s2819_s2] ss:$8 sps:$4 sm:$0xff]  }
   0x8   :  { %132 = vmatprep.subr.bf16.mxu0 %v1896_v5  ;;  %v60_v16 = vrot.slane %v58_v13, 1  ;;  %v69_v27 = vor.u32 %v67_v23, %v65_v17  ;;  %v73_v28 = vrot.slane %v71_v24, 1  ;;  %v1931_v30 = vld [vmem:[%s2819_s2 + $0x4] ss:$8 sps:$4 sm:$0xff]   ;;  %v1934_v32 = vld [vmem:[%s2819_s2 + $0x14] ss:$8 sps:$4 sm:$0xff]  }
   0x9   :  { %1109 = vmatprep.subr.bf16.mxu1 %v1931_v30  ;;  %v1911_v34 = vld [vmem:[%s2817_s1 + $0x20] ss:$8 sps:$4 sm:$0xff]   ;;  %v1916_v35 = vld [vmem:[%s2817_s1 + $0x34] ss:$8 sps:$4 sm:$0xff]   ;;  %v1936_v36 = vld [vmem:[%s2819_s2 + $0x10] ss:$8 sps:$4 sm:$0xff]  }
   0xa   :  { %v61_v19 = vor.u32 %v60_v16, %v56_v12  ;;  %v74_v33 = vsel %vm54_vm0, %v69_v27, %v73_v28  ;;  %1110 = vmatpush1.bf16.msra.mxu1 %v1933_v31  ;;  %v1937_v37 = vld [vmem:[%s2819_s2 + $0x24] ss:$8 sps:$4 sm:$0xff]   ;;  %v75_v38 = vshrl.u32 %v2189_v18, 16  ;;  %v1914_v39 = vld [vmem:[%s2817_s1 + $0x30] ss:$8 sps:$4 sm:$0xff]   ;;  %v315_v4 = vrot.slane %v2172_v9, 1 }
   0xb   :  { %133 = vmatpush1.bf16.msra.mxu0 %v1898_v10  ;;  %1111 = vmatprep.subr.bf16.mxu1 %v1934_v32  ;;  %v1919_v40 = vld [vmem:[%s2817_s1 + $0x84] ss:$8 sps:$4 sm:$0xff]   ;;  %v1939_v41 = vld [vmem:[%s2819_s2 + $0x20] ss:$8 sps:$4 sm:$0xff]   ;;  %v1940_v42 = vld [vmem:[%s2819_s2 + $0x34] ss:$8 sps:$4 sm:$0xff]  }
   0xc   :  { %134 = vmatprep.subr.bf16.mxu0 %v1899_v11  ;;  %v66_v21 = vsel %vm54_vm0, %v61_v19, %v65_v17  ;;  %v77_v43 = vor.u32 %v75_v38, %v73_v28  ;;  %v1942_v44 = vld [vmem:[%s2819_s2 + $0x30] ss:$8 sps:$4 sm:$0xff]   ;;  %v1946_v45 = vld [vmem:[%s2819_s2 + $0x44] ss:$8 sps:$4 sm:$0xff]   ;;  %v1948_v46 = vld [vmem:[%s2819_s2 + $0x40] ss:$8 sps:$4 sm:$0xff]  }
   0xd   :  { %v1952_v47 = vld [vmem:[%s2819_s2 + $0x54] ss:$8 sps:$4 sm:$0xff]   ;;  %v1917_v48 = vld [vmem:[%s2817_s1 + $0x80] ss:$8 sps:$4 sm:$0xff]   ;;  %v1954_v50 = vld [vmem:[%s2819_s2 + $0x50] ss:$8 sps:$4 sm:$0xff]  }
   0xe   :  { %1112 = vmatpush1.bf16.msra.mxu1 %v1936_v36  ;;  %v1922_v49 = vld [vmem:[%s2817_s1 + $0x94] ss:$8 sps:$4 sm:$0xff]   ;;  %v1958_v51 = vld [vmem:[%s2819_s2 + $0x64] ss:$8 sps:$4 sm:$0xff]   ;;  %v1920_v52 = vld [vmem:[%s2817_s1 + $0x90] ss:$8 sps:$4 sm:$0xff]  }
   0xf   :  { %135 = vmatpush1.bf16.msra.mxu0 %v1901_v15  ;;  %1113 = vmatprep.subr.bf16.mxu1 %v1937_v37  ;;  %v1925_v53 = vld [vmem:[%s2817_s1 + $0xa4] ss:$8 sps:$4 sm:$0xff]   ;;  %v1960_v54 = vld [vmem:[%s2819_s2 + $0x60] ss:$8 sps:$4 sm:$0xff]   ;;  %v1964_v55 = vld [vmem:[%s2819_s2 + $0x74] ss:$8 sps:$4 sm:$0xff]  }
  0x10   :  { %239 = vmatprep.subr.bf16.mxu0 %v1906_v20  ;;  %v1923_v56 = vld [vmem:[%s2817_s1 + $0xa0] ss:$8 sps:$4 sm:$0xff]   ;;  %v1929_v57 = vld [vmem:[%s2817_s1 + $0xb4] ss:$8 sps:$4 sm:$0xff]   ;;  %v1966_v58 = vld [vmem:[%s2819_s2 + $0x70] ss:$8 sps:$4 sm:$0xff]  }
  0x11   :  { %v1970_v59 = vld [vmem:[%s2819_s2 + $0x84] ss:$8 sps:$4 sm:$0xff]   ;;  %v1927_v60 = vld [vmem:[%s2817_s1 + $0xb0] ss:$8 sps:$4 sm:$0xff]   ;;  %v300_v61 = vld [vmem:[%s2818_s0] sm:$0xe] }
  0x12   :  { %1606 = vmatmul.mubr.msk.bf16.vlgmr.msra.gmra.mrb[0].mxu0 %vm118_vm1, %v66_v21  ;;  %1114 = vmatpush1.bf16.msra.mxu1 %v1939_v41  ;;  %v1945_v62 = vld [vmem:[%s2819_s2 + $0x104] ss:$8 sps:$4 sm:$0xff]   ;;  %v1972_v63 = vld [vmem:[%s2819_s2 + $0x80] ss:$8 sps:$4 sm:$0xff]   ;;  %v1629_v2 = vcombine.low %v300_v61, %v2164_v7  ;;  %v1951_v7 = vld [vmem:[%s2819_s2 + $0x114] ss:$8 sps:$4 sm:$0xff]  }
  0x13   :  { %240 = vmatpush1.bf16.msra.mxu0 %v1904_v22  ;;  %170 = vmatprep.mubr.bf16.mxu0 %v2115_v1  ;;  %v1926_v0 = vld [vmem:[%s2818_s0 + $0x10] ss:$0 sps:$4 sm:$0x77]   ;;  %v1943_v6 = vld [vmem:[%s2819_s2 + $0x100] ss:$8 sps:$4 sm:$0xff]  }
  0x14   :  { %241 = vmatprep.subr.bf16.mxu0 %v1909_v25  ;;  %1115 = vmatprep.subr.bf16.mxu1 %v1940_v42  ;;  %v314_v3 = vrot.slane %v1629_v2, 1  ;;  %v1957_v10 = vld [vmem:[%s2819_s2 + $0x124] ss:$8 sps:$4 sm:$0xff]   ;;  %v1955_v12 = vld [vmem:[%s2819_s2 + $0x120] ss:$8 sps:$4 sm:$0xff]  }
  0x15   :  { %v1963_v13 = vld [vmem:[%s2819_s2 + $0x134] ss:$8 sps:$4 sm:$0xff]   ;;  %v1961_v14 = vld [vmem:[%s2819_s2 + $0x130] ss:$8 sps:$4 sm:$0xff]   ;;  %v1969_v15 = vld [vmem:[%s2819_s2 + $0x144] ss:$8 sps:$4 sm:$0xff]  }
  0x16   :  { %1116 = vmatpush1.bf16.msra.mxu1 %v1942_v44  ;;  %v316_v5 = vsel %vm313_vm2, %v314_v3, %v315_v4  ;;  %v1967_v16 = vld [vmem:[%s2819_s2 + $0x140] ss:$8 sps:$4 sm:$0xff]   ;;  %v1973_v17 = vld [vmem:[%s2819_s2 + $0x150] ss:$8 sps:$4 sm:$0xff]   ;;  %v1981_v20 = vld [vmem:[%s2819_s2 + $0x164] ss:$8 sps:$4 sm:$0xff]  }
  0x17   :  { %242 = vmatpush1.bf16.msra.mxu0 %v1907_v26  ;;  %1117 = vmatprep.subr.bf16.mxu1 %v1946_v45  ;;  %v1978_v19 = vld [vmem:[%s2819_s2 + $0x90] ss:$8 sps:$4 sm:$0xff]   ;;  %v1979_v21 = vld [vmem:[%s2819_s2 + $0x160] ss:$8 sps:$4 sm:$0xff]   ;;  %v1982_v22 = vld [vmem:[%s2819_s2 + $0xa4] ss:$8 sps:$4 sm:$0xff]  }
  0x18   :  { %243 = vmatprep.subr.bf16.mxu0 %v1913_v29  ;;  %v1984_v23 = vld [vmem:[%s2819_s2 + $0xa0] ss:$8 sps:$4 sm:$0xff]   ;;  %v1987_v24 = vld [vmem:[%s2819_s2 + $0x174] ss:$8 sps:$4 sm:$0xff]   ;;  %v1985_v25 = vld [vmem:[%s2819_s2 + $0x170] ss:$8 sps:$4 sm:$0xff]  }
  0x19   :  { %v1988_v26 = vld [vmem:[%s2819_s2 + $0xb4] ss:$8 sps:$4 sm:$0xff]   ;;  %v1990_v27 = vld [vmem:[%s2819_s2 + $0xb0] ss:$8 sps:$4 sm:$0xff]   ;;  %v1993_v28 = vld [vmem:[%s2819_s2 + $0x184] ss:$8 sps:$4 sm:$0xff]  }
  0x1a   :  { %1607 = vmatmul.mubr.msk.bf16.gmra.mrb[4].mxu0 %vm118_vm1, %v74_v33  ;;  %1118 = vmatpush1.bf16.msra.mxu1 %v1948_v46  ;;  %v1991_v29 = vld [vmem:[%s2819_s2 + $0x180] ss:$8 sps:$4 sm:$0xff]   ;;  %v1994_v30 = vld [vmem:[%s2819_s2 + $0xc4] ss:$8 sps:$4 sm:$0xff]   ;;  %v1999_v32 = vld [vmem:[%s2819_s2 + $0x194] ss:$8 sps:$4 sm:$0xff]  }
  0x1b   :  { %244 = vmatpush1.bf16.msra.mxu0 %v1911_v34  ;;  %180 = vmatprep.mubr.bf16.mxu0 %v2115_v1  ;;  %v1996_v31 = vld [vmem:[%s2819_s2 + $0xc0] ss:$8 sps:$4 sm:$0xff]   ;;  %v1997_v33 = vld [vmem:[%s2819_s2 + $0x190] ss:$8 sps:$4 sm:$0xff]   ;;  %v2000_v34 = vld [vmem:[%s2819_s2 + $0xd4] ss:$8 sps:$4 sm:$0xff]  }
  0x1c   :  { %245 = vmatprep.subr.bf16.mxu0 %v1916_v35  ;;  %1119 = vmatprep.subr.bf16.mxu1 %v1952_v47  ;;  %v2002_v35 = vld [vmem:[%s2819_s2 + $0xd0] ss:$8 sps:$4 sm:$0xff]   ;;  %v2005_v36 = vld [vmem:[%s2819_s2 + $0x1a4] ss:$8 sps:$4 sm:$0xff]   ;;  %v2003_v37 = vld [vmem:[%s2819_s2 + $0x1a0] ss:$8 sps:$4 sm:$0xff]  }
  0x1d   :  { %v2006_v38 = vld [vmem:[%s2819_s2 + $0xe4] ss:$8 sps:$4 sm:$0xff]   ;;  %v2009_v41 = vld [vmem:[%s2819_s2 + $0x1b0] ss:$8 sps:$4 sm:$0xff]   ;;  %v2012_v42 = vld [vmem:[%s2819_s2 + $0xf4] ss:$8 sps:$4 sm:$0xff]  }
  0x1e   :  { %1120 = vmatpush1.bf16.msra.mxu1 %v1954_v50  ;;  %v2017_v44 = vld [vmem:[%s2819_s2 + $0x1c4] ss:$8 sps:$4 sm:$0xff]   ;;  %v2015_v45 = vld [vmem:[%s2819_s2 + $0x1c0] ss:$8 sps:$4 sm:$0xff]   ;;  %v2023_v47 = vld [vmem:[%s2819_s2 + $0x1d4] ss:$8 sps:$4 sm:$0xff]  }
  0x1f   :  { %246 = vmatpush1.bf16.msra.mxu0 %v1914_v39  ;;  %1121 = vmatprep.subr.bf16.mxu1 %v1958_v51  ;;  %v2008_v39 = vld [vmem:[%s2819_s2 + $0xe0] ss:$8 sps:$4 sm:$0xff]   ;;  %v2020_v46 = vld [vmem:[%s2819_s2 + $0x204] ss:$8 sps:$4 sm:$0xff]   ;;  %v2035_v51 = vld [vmem:[%s2819_s2 + $0x1f4] ss:$8 sps:$4 sm:$0xff]  }
  0x20   :  { %368 = vmatprep.subr.bf16.mxu0 %v1919_v40  ;;  %v2011_v40 = vld [vmem:[%s2819_s2 + $0x1b4] ss:$8 sps:$4 sm:$0xff]   ;;  %v2027_v50 = vld [vmem:[%s2819_s2 + $0x1e0] ss:$8 sps:$4 sm:$0xff]  }
  0x22   :  { %1608 = vmatmul.mubr.msk.bf16.gmra.mrb[8].mxu0 %vm118_vm1, %v77_v43  ;;  %1122 = vmatpush1.bf16.msra.mxu1 %v1960_v54  ;;  %v2014_v43 = vld [vmem:[%s2819_s2 + $0xf0] ss:$8 sps:$4 sm:$0xff]  }
  0x23   :  { %271 = vmatprep.mubr.bf16.mxu0 %v2115_v1  ;;  %1123 = vmatprep.subr.bf16.mxu1 %v1964_v55 }
  0x26   :  { %1124 = vmatpush1.bf16.msra.mxu1 %v1966_v58  ;;  %v1641_v58 = vld [vmem:[%s2820_s3 + $0x1] ss:$4 sm:$0x3] }
  0x27   :  { %1125 = vmatprep.subr.bf16.mxu1 %v1970_v59 }
  0x2a   :  { %1618 = vmatmul.mubr.msk.bf16.vlgmr.msra.gmra.mrb[0].mxu0 %vm118_vm1, %v2167_v8  ;;  %1126 = vmatpush1.bf16.msra.mxu1 %v1972_v63  ;;  %v317_v8 = vrot.slane %v2189_v18, 1  ;;  %v1976_v18 = vld [vmem:[%s2819_s2 + $0x94] ss:$8 sps:$4 sm:$0xff]  }
  0x2b   :  { %369 = vmatpush1.bf16.msra.mxu0 %v1917_v48  ;;  %281 = vmatprep.mubr.bf16.mxu0 %v2115_v1  ;;  %v2021_v48 = vld [vmem:[%s2819_s2 + $0x1d0] ss:$8 sps:$4 sm:$0xff]  }
  0x2c   :  { %370 = vmatprep.subr.bf16.mxu0 %v1922_v49  ;;  %v318_v11 = vsel %vm313_vm2, %v315_v4, %v317_v8  ;;  %1127 = vmatprep.subr.bf16.mxu1 %v1976_v18  ;;  %v2029_v49 = vld [vmem:[%s2819_s2 + $0x1e4] ss:$8 sps:$4 sm:$0xff]  }
  0x2e   :  { %1128 = vmatpush1.bf16.msra.mxu1 %v1978_v19 }
  0x2f   :  { %371 = vmatpush1.bf16.msra.mxu0 %v1920_v52  ;;  %1129 = vmatprep.subr.bf16.mxu1 %v1982_v22  ;;  %v2033_v52 = vld [vmem:[%s2819_s2 + $0x1f0] ss:$8 sps:$4 sm:$0xff]  }
  0x30   :  { %372 = vmatprep.subr.bf16.mxu0 %v1925_v53  ;;  %v441_v53 = vlaneseq }
  0x32   :  { %1619 = vmatmul.mubr.msk.bf16.gmra.mrb[4].mxu0 %vm118_vm1, %v2172_v9  ;;  %v1949_v9 = vld [vmem:[%s2819_s2 + $0x110] ss:$8 sps:$4 sm:$0xff]   ;;  %1130 = vmatpush1.bf16.msra.mxu1 %v1984_v23  ;;  %v2469_v54 = vshrl.u32 %v441_v53, 7 }
  0x33   :  { %373 = vmatpush1.bf16.msra.mxu0 %v1923_v56  ;;  %291 = vmatprep.mubr.bf16.mxu0 %v2115_v1  ;;  %v439_v56 = vld [vmem:[%s2820_s3] ss:$4 sm:$0x3] }
  0x34   :  { %374 = vmatprep.subr.bf16.mxu0 %v1929_v57  ;;  %1131 = vmatprep.subr.bf16.mxu1 %v1988_v26  ;;  %v2472_v55 = vsub.s32 0, %v2469_v54  ;;  %v2478_v57 = vsub.s32 1, %v2469_v54  ;;  %vm550_vm3 = vcmp.ge.s32.totalorder %v2469_v54, 1 }
  0x35   :  { %vm2539_vm11 = vmpackc.low %vm2116_vm10, %vm550_vm3 }
  0x36   :  { %1132 = vmatpush1.bf16.msra.mxu1 %v1990_v27  ;;  %v444_v59 = vrot.slane %v439_v56, %v2472_v55  ;;  %v467_v61 = vrot.slane %v1641_v58, %v2472_v55  ;;  %v471_v63 = vrot.slane %v1641_v58, %v2478_v57 }
  0x37   :  { %375 = vmatpush1.bf16.msra.mxu0 %v1927_v60  ;;  %1133 = vmatprep.subr.bf16.mxu1 %v1994_v30  ;;  %v448_v60 = vrot.slane %v439_v56, %v2478_v57 }
  0x38   :  { %888 = vmatprep.subr.bf16.mxu0 %v1945_v62 }
  0x3a   :  { %1620 = vmatmul.mubr.msk.bf16.gmra.mrb[8].mxu0 %vm118_vm1, %v1926_v0  ;;  %1134 = vmatpush1.bf16.msra.mxu1 %v1996_v31 }
  0x3b   :  { %400 = vmatprep.mubr.bf16.mxu0 %v2115_v1  ;;  %1135 = vmatprep.subr.bf16.mxu1 %v2000_v34 }
  0x3e   :  { %1136 = vmatpush1.bf16.msra.mxu1 %v2002_v35  ;;  %v547_v35 = vadd.s32 16, %v2469_v54 }
  0x3f   :  { %1137 = vmatprep.subr.bf16.mxu1 %v2006_v38 }
  0x40   :  { %vm557_vm4 = vcmp.le.s32.totalorder %v547_v35, 16  ;;  %vm567_vm5 = vcmp.ge.s32.totalorder %v547_v35, 21  ;;  %v2053_v35 = vld [vmem:[%s2819_s2 + $0x284] ss:$8 sps:$4 sm:$0xff]  }
  0x41   :  { %vm2553_vm12 = vmor %vm557_vm4, %vm567_vm5 }
  0x42   :  { %1638 = vmatmul.mubr.msk.bf16.vlgmr.msra.gmra.mrb[0].mxu0 %vm118_vm1, %v316_v5  ;;  %1138 = vmatpush1.bf16.msra.mxu1 %v2008_v39 }
  0x43   :  { %410 = vmatprep.mubr.bf16.mxu0 %v2115_v1  ;;  %889 = vmatpush1.bf16.msra.mxu0 %v1943_v6 }
  0x44   :  { %890 = vmatprep.subr.bf16.mxu0 %v1951_v7  ;;  %1139 = vmatprep.subr.bf16.mxu1 %v2012_v42 }
  0x46   :  { %1140 = vmatpush1.bf16.msra.mxu1 %v2014_v43 }
  0x47   :  { %891 = vmatpush1.bf16.msra.mxu0 %v1949_v9  ;;  %1385 = vmatprep.subr.bf16.mxu1 %v2020_v46 }
  0x48   :  { %892 = vmatprep.subr.bf16.mxu0 %v1957_v10 }
  0x4a   :  { %1639 = vmatmul.mubr.msk.bf16.gmra.mrb[4].mxu0 %vm118_vm1, %v318_v11 }
  0x4b   :  { %420 = vmatprep.mubr.bf16.mxu0 %v2115_v1  ;;  %893 = vmatpush1.bf16.msra.mxu0 %v1955_v12  ;;  %v1975_v1 = vld [vmem:[%s2819_s2 + $0x154] ss:$8 sps:$4 sm:$0xff]  }
  0x4c   :  { %894 = vmatprep.subr.bf16.mxu0 %v1963_v13 }
  0x4f   :  { %895 = vmatpush1.bf16.msra.mxu0 %v1961_v14 }
  0x50   :  { %896 = vmatprep.subr.bf16.mxu0 %v1969_v15 }
  0x52   :  { %1640 = vmatmul.mubr.msk.bf16.gmra.mrb[8].mxu0 %vm118_vm1, %v317_v8 }
  0x53   :  { %897 = vmatpush1.bf16.msra.mxu0 %v1967_v16 }
  0x54   :  { %898 = vmatprep.subr.bf16.mxu0 %v1975_v1 }
  0x57   :  { %899 = vmatpush1.bf16.msra.mxu0 %v1973_v17 }
  0x58   :  { %900 = vmatprep.subr.bf16.mxu0 %v1981_v20 }
  0x5b   :  { %901 = vmatpush1.bf16.msra.mxu0 %v1979_v21 }
  0x5c   :  { %902 = vmatprep.subr.bf16.mxu0 %v1987_v24 }
  0x5f   :  { %903 = vmatpush1.bf16.msra.mxu0 %v1985_v25 }
  0x60   :  { %904 = vmatprep.subr.bf16.mxu0 %v1993_v28 }
  0x63   :  { %905 = vmatpush1.bf16.msra.mxu0 %v1991_v29 }
  0x64   :  { %906 = vmatprep.subr.bf16.mxu0 %v1999_v32 }
  0x67   :  { %907 = vmatpush1.bf16.msra.mxu0 %v1997_v33 }
  0x68   :  { %908 = vmatprep.subr.bf16.mxu0 %v2005_v36 }
  0x6b   :  { %909 = vmatpush1.bf16.msra.mxu0 %v2003_v37 }
  0x6c   :  { %910 = vmatprep.subr.bf16.mxu0 %v2011_v40 }
  0x6f   :  { %911 = vmatpush1.bf16.msra.mxu0 %v2009_v41 }
  0x70   :  { %912 = vmatprep.subr.bf16.mxu0 %v2017_v44 }
  0x73   :  { %913 = vmatpush1.bf16.msra.mxu0 %v2015_v45 }
  0x74   :  { %914 = vmatprep.subr.bf16.mxu0 %v2023_v47 }
  0x77   :  { %915 = vmatpush1.bf16.msra.mxu0 %v2021_v48 }
  0x78   :  { %916 = vmatprep.subr.bf16.mxu0 %v2029_v49 }
  0x7b   :  { %917 = vmatpush1.bf16.msra.mxu0 %v2027_v50 }
  0x7c   :  { %918 = vmatprep.subr.bf16.mxu0 %v2035_v51  ;;  %v2518_v51 = vadd.s32 32, %v2469_v54 }
  0x7e   :  { %vm574_vm13 = vcmp.le.s32.totalorder %v2518_v51, 36 }
  0x7f   :  { %919 = vmatpush1.bf16.msra.mxu0 %v2033_v52 }
 0x115   :  { %v402_v62 = vpop.f32.mrb[0].mxu0 }
 0x116   :  { %v451_v0 = vmul.f32 %v444_v59, %v402_v62  ;;  %v404_v2 = vpop.f32.mrb[1].mxu0 }
 0x117   :  { %v452_v3 = vmul.f32 %v448_v60, %v404_v2  ;;  %v406_v4 = vpop.f32.mrb[2].mxu0 }
 0x118   :  { %v2487_v5 = vadd.f32 %v467_v61, %v451_v0  ;;  %v453_v6 = vmul.f32 %v444_v59, %v406_v4  ;;  %v408_v7 = vpop.f32.mrb[3].mxu0 }
 0x119   :  { %v2489_v8 = vadd.f32 %v471_v63, %v452_v3  ;;  %v454_v9 = vmul.f32 %v448_v60, %v408_v7 }
 0x11a   :  { %v494_v10 = vmin.f32 %v2487_v5, 0.0  ;;  %v2492_v11 = vadd.f32 %v467_v61, %v453_v6  ;;  %vm484_vm6 = vcmp.gt.f32.partialorder %v2487_v5, 0.0 }
 0x11b   :  { %v495_v12 = vmin.f32 %v2489_v8, 0.0  ;;  %v2495_v13 = vadd.f32 %v471_v63, %v454_v9  ;;  %vm485_vm7 = vcmp.gt.f32.partialorder %v2489_v8, 0.0 }
 0x11c   :  { %v504_v14 = vmul.f32 1.442695, %v494_v10  ;;  %v496_v15 = vmin.f32 %v2492_v11, 0.0  ;;  %vm486_vm8 = vcmp.gt.f32.partialorder %v2492_v11, 0.0 }
 0x11d   :  { %v506_v16 = vmul.f32 1.442695, %v495_v12  ;;  %v497_v1 = vmin.f32 %v2495_v13, 0.0  ;;  %v412_v17 = vpop.f32.mrb[4].mxu0  ;;  %vm487_vm9 = vcmp.gt.f32.partialorder %v2495_v13, 0.0 }
 0x11e   :  { %2075 = vpow2.f32 %v504_v14  ;;  %v508_v18 = vmul.f32 1.442695, %v496_v15  ;;  %v455_v19 = vmul.f32 %v444_v59, %v412_v17  ;;  %v414_v20 = vpop.f32.mrb[5].mxu0  ;;  %v2018_v12 = vld [vmem:[%s2819_s2 + $0x200] ss:$8 sps:$4 sm:$0xff]  }
 0x11f   :  { %2077 = vpow2.f32 %v506_v16  ;;  %v510_v21 = vmul.f32 1.442695, %v497_v1  ;;  %v456_v22 = vmul.f32 %v448_v60, %v414_v20  ;;  %v416_v23 = vpop.f32.mrb[6].mxu0  ;;  %v2026_v14 = vld [vmem:[%s2819_s2 + $0x214] ss:$8 sps:$4 sm:$0xff]  }
 0x120   :  { %2079 = vpow2.f32 %v508_v18  ;;  %v2499_v24 = vadd.f32 %v467_v61, %v455_v19  ;;  %v457_v25 = vmul.f32 %v444_v59, %v416_v23  ;;  %v418_v26 = vpop.f32.mrb[7].mxu0  ;;  %v2024_v23 = vld [vmem:[%s2819_s2 + $0x210] ss:$8 sps:$4 sm:$0xff]   ;;  %v2044_v16 = vld [vmem:[%s2819_s2 + $0x254] ss:$8 sps:$4 sm:$0xff]  }
 0x121   :  { %2081 = vpow2.f32 %v510_v21  ;;  %v2501_v27 = vadd.f32 %v471_v63, %v456_v22  ;;  %v458_v28 = vmul.f32 %v448_v60, %v418_v26 }
 0x122   :  { %v498_v29 = vmin.f32 %v2499_v24, 0.0  ;;  %v2504_v30 = vadd.f32 %v467_v61, %v457_v25  ;;  %vm488_vm14 = vcmp.gt.f32.partialorder %v2499_v24, 0.0 }
 0x123   :  { %v499_v31 = vmin.f32 %v2501_v27, 0.0  ;;  %v2507_v32 = vadd.f32 %v471_v63, %v458_v28  ;;  %vm489_vm15 = vcmp.gt.f32.partialorder %v2501_v27, 0.0 }
 0x124   :  { %v512_v33 = vmul.f32 1.442695, %v498_v29  ;;  %v500_v34 = vmin.f32 %v2504_v30, 0.0  ;;  %vm490_vm1 = vcmp.gt.f32.partialorder %v2504_v30, 0.0 }
 0x125   :  { %v514_v36 = vmul.f32 1.442695, %v499_v31  ;;  %v501_v37 = vmin.f32 %v2507_v32, 0.0  ;;  %v422_v38 = vpop.f32.mrb[8].mxu0 }
 0x126   :  { %2083 = vpow2.f32 %v512_v33  ;;  %v516_v39 = vmul.f32 1.442695, %v500_v34  ;;  %v459_v40 = vmul.f32 %v444_v59, %v422_v38  ;;  %v424_v41 = vpop.f32.mrb[9].mxu0 }
 0x127   :  { %2085 = vpow2.f32 %v514_v36  ;;  %v518_v42 = vmul.f32 1.442695, %v501_v37  ;;  %v460_v43 = vmul.f32 %v448_v60, %v424_v41  ;;  %v426_v44 = vpop.f32.mrb[10].mxu0 }
 0x128   :  { %v2076_v45 = vpop.eup %2075  ;;  %2087 = vpow2.f32 %v516_v39  ;;  %v2513_v46 = vadd.f32 %v467_v61, %v459_v40  ;;  %v427_v47 = vpop.f32.mrb[11].mxu0 }
 0x129   :  { %v2078_v48 = vpop.eup %2077  ;;  %2089 = vpow2.f32 %v518_v42  ;;  %v2515_v49 = vadd.f32 %v471_v63, %v460_v43  ;;  %v1642_v50 = vadd.f32 -1.0, %v2076_v45  ;;  %v2038_v42 = vld [vmem:[%s2819_s2 + $0x234] ss:$8 sps:$4 sm:$0xff]  }
 0x12a   :  { %v2080_v52 = vpop.eup %2079  ;;  %v502_v53 = vmin.f32 %v2513_v46, 0.0  ;;  %v1643_v56 = vadd.f32 -1.0, %v2078_v48  ;;  %vm492_vm4 = vcmp.gt.f32.partialorder %v2513_v46, 0.0 }
 0x12b   :  { %v2082_v58 = vpop.eup %2081  ;;  %v1644_v59 = vadd.f32 -1.0, %v2080_v52  ;;  %v503_v60 = vmin.f32 %v2515_v49, 0.0  ;;  %v534_v61 = vsel %vm484_vm6, %v2487_v5, %v1642_v50  ;;  %vm493_vm5 = vcmp.gt.f32.partialorder %v2515_v49, 0.0  ;;  %vm2589_vm6 = vmpackc.low %vm2116_vm10, %vm2553_vm12 }
 0x12c   :  { %v520_v62 = vmul.f32 1.442695, %v502_v53  ;;  %v1645_v63 = vadd.f32 -1.0, %v2082_v58  ;;  %v535_v0 = vsel %vm485_vm7, %v2489_v8, %v1643_v56  ;;  %v595_v2 = vsel %vm550_vm3, %v534_v61, 0.0  ;;  %vm2640_vm7 = vmpackc.low %vm574_vm13, %vm574_vm13 }
 0x12d   :  { %v522_v3 = vmul.f32 1.442695, %v503_v60  ;;  %v536_v4 = vsel %vm486_vm8, %v2492_v11, %v1644_v59  ;;  %v596_v6 = vsel %vm550_vm3, %v535_v0, 0.0  ;;  %vm491_vm3 = vcmp.gt.f32.partialorder %v2507_v32, 0.0 }
 0x12e   :  { %2091 = vpow2.f32 %v520_v62  ;;  %v537_v7 = vsel %vm487_vm9, %v2495_v13, %v1645_v63  ;;  %v2534_v9 = vpack.c.bf16 %v536_v4, %v595_v2  ;;  %v1752_v8 = vpack.c.bf16 %v536_v4, %v534_v61  ;;  %v2036_v62 = vld [vmem:[%s2819_s2 + $0x230] ss:$8 sps:$4 sm:$0xff]  }
 0x12f   :  { %2093 = vpow2.f32 %v522_v3  ;;  %v2543_v10 = vpack.c.bf16 %v537_v7, %v596_v6  ;;  %v1749_v11 = vpack.c.bf16 %v537_v7, %v535_v0 }
 0x130   :  { %v2084_v13 = vpop.eup %2083  ;;  %v679_v18 = vshll.u32 %v2534_v9, 16  ;;  %v677_v37 = vshrl.u32 %v2534_v9, 16  ;;  %v1209_v44 = vrot.slane %v2534_v9, 1 }
 0x131   :  { %v2086_v54 = vpop.eup %2085  ;;  %v1646_v15 = vadd.f32 -1.0, %v2084_v13  ;;  %1750 = vmatprep.mubr.msk.bf16.mxu1 %vm2539_vm11, %v1749_v11  ;;  %v691_v22 = vshll.u32 %v2543_v10, 16  ;;  %v689_v41 = vshrl.u32 %v2543_v10, 16  ;;  %v1212_v52 = vrot.slane %v2543_v10, 1  ;;  %v2039_v11 = vld [vmem:[%s2819_s2 + $0x240] ss:$8 sps:$4 sm:$0xff]  }
 0x132   :  { %v2088_v1 = vpop.eup %2087  ;;  %v1647_v17 = vadd.f32 -1.0, %v2086_v54  ;;  %1753 = vmatmul.mubr.msk.bf16.vlgmr.msra.gmra.mrb[0].mxu1 %vm2539_vm11, %v1752_v8  ;;  %v681_v34 = vrot.slane %v679_v18, 1 }
 0x133   :  { %v2090_v19 = vpop.eup %2089  ;;  %v538_v20 = vsel %vm488_vm14, %v2499_v24, %v1646_v15  ;;  %v1648_v21 = vadd.f32 -1.0, %v2088_v1  ;;  %1386 = vmatpush1.bf16.msra.mxu1 %v2018_v12  ;;  %v2032_v24 = vld [vmem:[%s2819_s2 + $0x224] ss:$8 sps:$4 sm:$0xff]   ;;  %v693_v39 = vrot.slane %v691_v22, 1 }
 0x134   :  { %v539_v25 = vsel %vm489_vm15, %v2501_v27, %v1647_v17  ;;  %v1649_v26 = vadd.f32 -1.0, %v2090_v19  ;;  %v599_v28 = vsel %vm2553_vm12, %v538_v20, 0.0  ;;  %1387 = vmatprep.subr.bf16.mxu1 %v2026_v14  ;;  %v682_v58 = vor.u32 %v681_v34, %v677_v37  ;;  %v2056_v37 = vld [vmem:[%s2819_s2 + $0x294] ss:$8 sps:$4 sm:$0xff]  }
 0x135   :  { %v540_v29 = vsel %vm490_vm1, %v2504_v30, %v1648_v21  ;;  %v600_v27 = vsel %vm2553_vm12, %v539_v25, 0.0  ;;  %v694_v63 = vor.u32 %v693_v39, %v689_v41  ;;  %v2057_v39 = vld [vmem:[%s2819_s2 + $0x2a0] ss:$8 sps:$4 sm:$0xff]   ;;  %v2060_v41 = vld [vmem:[%s2819_s2 + $0x2b0] ss:$8 sps:$4 sm:$0xff]  }
 0x136   :  { %v541_v31 = vsel %vm491_vm3, %v2507_v32, %v1649_v26  ;;  %v2584_v33 = vpack.c.bf16 %v540_v29, %v599_v28  ;;  %v1758_v30 = vpack.c.bf16 %v540_v29, %v538_v20  ;;  %v2030_v32 = vld [vmem:[%s2819_s2 + $0x220] ss:$8 sps:$4 sm:$0xff]  }
 0x137   :  { %v2593_v36 = vpack.c.bf16 %v541_v31, %v600_v27  ;;  %1388 = vmatpush1.bf16.msra.mxu1 %v2024_v23  ;;  %v1755_v38 = vpack.c.bf16 %v541_v31, %v539_v25  ;;  %v2042_v23 = vld [vmem:[%s2819_s2 + $0x250] ss:$8 sps:$4 sm:$0xff]   ;;  %v2045_v27 = vld [vmem:[%s2819_s2 + $0x260] ss:$8 sps:$4 sm:$0xff]   ;;  %v2050_v31 = vld [vmem:[%s2819_s2 + $0x274] ss:$8 sps:$4 sm:$0xff]  }
 0x138   :  { %v2092_v40 = vpop.eup %2091  ;;  %1389 = vmatprep.subr.bf16.mxu1 %v2032_v24  ;;  %v684_v43 = vshll.u32 %v2584_v33, 16  ;;  %v1210_v45 = vrot.slane %v2584_v33, 1  ;;  %v700_v12 = vshrl.u32 %v2584_v33, 16  ;;  %v2047_v24 = vld [vmem:[%s2819_s2 + $0x264] ss:$8 sps:$4 sm:$0xff]  }
 0x139   :  { %v2094_v47 = vpop.eup %2093  ;;  %v1650_v48 = vadd.f32 -1.0, %v2092_v40  ;;  %1756 = vmatprep.mubr.msk.bf16.mxu1 %vm2589_vm6, %v1755_v38  ;;  %v696_v50 = vshll.u32 %v2593_v36, 16  ;;  %v1213_v53 = vrot.slane %v2593_v36, 1  ;;  %v708_v54 = vshrl.u32 %v2593_v36, 16  ;;  %v2048_v33 = vld [vmem:[%s2819_s2 + $0x270] ss:$8 sps:$4 sm:$0xff]  }
 0x13a   :  { %v1651_v56 = vadd.f32 -1.0, %v2094_v47  ;;  %1759 = vmatmul.mubr.msk.bf16.gmra.mrb[4].mxu1 %vm2589_vm6, %v1758_v30  ;;  %v686_v59 = vrot.slane %v684_v43, 1  ;;  %v2614_v60 = vsel %vm313_vm2, %v1209_v44, %v1210_v45  ;;  %v2051_v36 = vld [vmem:[%s2819_s2 + $0x280] ss:$8 sps:$4 sm:$0xff]   ;;  %v2054_v38 = vld [vmem:[%s2819_s2 + $0x290] ss:$8 sps:$4 sm:$0xff]  }
 0x13b   :  { %v542_v61 = vsel %vm492_vm4, %v2513_v46, %v1650_v48  ;;  %1390 = vmatpush1.bf16.msra.mxu1 %v2030_v32  ;;  %v698_v0 = vrot.slane %v696_v50, 1  ;;  %v1214_v2 = vsel %vm313_vm2, %v1212_v52, %v1213_v53  ;;  %v2041_v46 = vld [vmem:[%s2819_s2 + $0x244] ss:$8 sps:$4 sm:$0xff]   ;;  %v2062_v40 = vld [vmem:[%s2819_s2 + $0x2b4] ss:$8 sps:$4 sm:$0xff]  }
 0x13c   :  { %v543_v3 = vsel %vm493_vm5, %v2515_v49, %v1651_v56  ;;  %1391 = vmatprep.subr.bf16.mxu1 %v2038_v42  ;;  %v687_v4 = vsel %vm54_vm0, %v682_v58, %v686_v59  ;;  %v603_v6 = vsel %vm574_vm13, %v542_v61, 0.0  ;;  %v1764_v14 = vpack.c.bf16 %v542_v61, %v542_v61  ;;  %v2059_v32 = vld [vmem:[%s2819_s2 + $0x2a4] ss:$8 sps:$4 sm:$0xff]   ;;  %v2063_v43 = vld [vmem:[%s2819_s2 + $0x2c0] ss:$8 sps:$4 sm:$0xff]  }
 0x13d   :  { %v699_v7 = vsel %vm54_vm0, %v694_v63, %v698_v0  ;;  %v604_v9 = vsel %vm574_vm13, %v543_v3, 0.0  ;;  %v2635_v5 = vpack.c.bf16 %v603_v6, %v603_v6  ;;  %v1761_v8 = vpack.c.bf16 %v543_v3, %v543_v3  ;;  %v2065_v42 = vld [vmem:[%s2819_s2 + $0x2c4] ss:$8 sps:$4 sm:$0xff]   ;;  %v2068_v44 = vld [vmem:[%s2819_s2 + $0x2d4] ss:$8 sps:$4 sm:$0xff]  }
 0x13e   :  { %920 = vmatprep.mubr.bf16.mxu0 %v699_v7  ;;  %v2644_v10 = vpack.c.bf16 %v604_v9, %v604_v9  ;;  %v702_v17 = vor.u32 %v700_v12, %v686_v59  ;;  %v710_v20 = vor.u32 %v708_v54, %v698_v0  ;;  %v2071_v47 = vld [vmem:[%s2819_s2 + $0x2e4] ss:$8 sps:$4 sm:$0xff]   ;;  %v2069_v48 = vld [vmem:[%s2819_s2 + $0x2e0] ss:$8 sps:$4 sm:$0xff]   ;;  %v2074_v50 = vld [vmem:[%s2819_s2 + $0x2f4] ss:$8 sps:$4 sm:$0xff]  }
 0x13f   :  { %1392 = vmatpush1.bf16.msra.mxu1 %v2036_v62  ;;  %921 = vmatmul.mubr.bf16.vlgmr.msra.gmra.mrb[12].mxu0 %v687_v4  ;;  %v704_v13 = vshll.u32 %v2635_v5, 16  ;;  %v1215_v51 = vrot.slane %v2635_v5, 1  ;;  %v716_v34 = vshrl.u32 %v2635_v5, 16  ;;  %v2072_v52 = vld [vmem:[%s2819_s2 + $0x2f0] ss:$8 sps:$4 sm:$0xff]  }
 0x140   :  { %1762 = vmatprep.mubr.msk.bf16.mxu1 %vm2640_vm7, %v1761_v8  ;;  %1393 = vmatprep.subr.bf16.mxu1 %v2041_v46  ;;  %v712_v15 = vshll.u32 %v2644_v10, 16  ;;  %v1217_v1 = vrot.slane %v2644_v10, 1  ;;  %v719_v28 = vshrl.u32 %v2644_v10, 16  ;;  %v1830_v6 = vld [vmem:[%s2820_s3 + $0x2] ss:$4 sm:$0x3] }
 0x141   :  { %v706_v18 = vrot.slane %v704_v13, 1  ;;  %v1216_v19 = vsel %vm313_vm2, %v1210_v45, %v1215_v51  ;;  %v2066_v45 = vld [vmem:[%s2819_s2 + $0x2d0] ss:$8 sps:$4 sm:$0xff]   ;;  %v1831_v46 = vld [vmem:[%s2820_s3 + $0x3] ss:$4 sm:$0x3]  ;;  %v1462_v7 = vrot.slane %v1830_v6, %v2472_v55  ;;  %v2748_v5 = vrot.slane %v1830_v6, %v2478_v57 }
 0x142   :  { %1765 = vmatmul.mubr.msk.bf16.gmra.mrb[8].mxu1 %vm2640_vm7, %v1764_v14  ;;  %v714_v21 = vrot.slane %v712_v15, 1  ;;  %v1218_v22 = vsel %vm313_vm2, %v1213_v53, %v1217_v1  ;;  %v2751_v8 = vrot.slane %v1831_v46, %v2472_v55  ;;  %v2754_v12 = vrot.slane %v1831_v46, %v2478_v57 }
 0x143   :  { %1394 = vmatpush1.bf16.msra.mxu1 %v2039_v11  ;;  %1417 = vmatprep.mubr.bf16.mxu1 %v1214_v2  ;;  %v707_v25 = vsel %vm54_vm0, %v702_v17, %v706_v18  ;;  %v718_v30 = vor.u32 %v716_v34, %v706_v18 }
 0x144   :  { %v715_v26 = vsel %vm54_vm0, %v710_v20, %v714_v21  ;;  %1395 = vmatprep.subr.bf16.mxu1 %v2044_v16  ;;  %v721_v29 = vor.u32 %v719_v28, %v714_v21 }
 0x145   :  { %930 = vmatprep.mubr.bf16.mxu0 %v715_v26 }
 0x147   :  { %1396 = vmatpush1.bf16.msra.mxu1 %v2042_v23  ;;  %931 = vmatmul.mubr.bf16.gmra.mrb[16].mxu0 %v707_v25 }
 0x148   :  { %940 = vmatprep.mubr.bf16.mxu0 %v721_v29  ;;  %1397 = vmatprep.subr.bf16.mxu1 %v2047_v24 }
 0x14b   :  { %1398 = vmatpush1.bf16.msra.mxu1 %v2045_v27 }
 0x14c   :  { %1399 = vmatprep.subr.bf16.mxu1 %v2050_v31 }
 0x14f   :  { %1400 = vmatpush1.bf16.msra.mxu1 %v2048_v33  ;;  %941 = vmatmul.mubr.bf16.gmra.mrb[20].mxu0 %v718_v30 }
 0x150   :  { %1401 = vmatprep.subr.bf16.mxu1 %v2053_v35 }
 0x153   :  { %1402 = vmatpush1.bf16.msra.mxu1 %v2051_v36 }
 0x154   :  { %1403 = vmatprep.subr.bf16.mxu1 %v2056_v37 }
 0x157   :  { %1404 = vmatpush1.bf16.msra.mxu1 %v2054_v38 }
 0x158   :  { %1405 = vmatprep.subr.bf16.mxu1 %v2059_v32 }
 0x15b   :  { %1406 = vmatpush1.bf16.msra.mxu1 %v2057_v39 }
 0x15c   :  { %1407 = vmatprep.subr.bf16.mxu1 %v2062_v40 }
 0x15f   :  { %1408 = vmatpush1.bf16.msra.mxu1 %v2060_v41 }
 0x160   :  { %1409 = vmatprep.subr.bf16.mxu1 %v2065_v42 }
 0x163   :  { %1410 = vmatpush1.bf16.msra.mxu1 %v2063_v43 }
 0x164   :  { %1411 = vmatprep.subr.bf16.mxu1 %v2068_v44 }
 0x167   :  { %1412 = vmatpush1.bf16.msra.mxu1 %v2066_v45 }
 0x168   :  { %1413 = vmatprep.subr.bf16.mxu1 %v2071_v47 }
 0x16b   :  { %1414 = vmatpush1.bf16.msra.mxu1 %v2069_v48 }
 0x16c   :  { %1415 = vmatprep.subr.bf16.mxu1 %v2074_v50 }
 0x16f   :  { %1416 = vmatpush1.bf16.msra.mxu1 %v2072_v52 }
 0x172   :  { %1418 = vmatmul.mubr.bf16.vlgmr.msra.gmra.mrb[0].mxu1 %v2614_v60 }
 0x173   :  { %1427 = vmatprep.mubr.bf16.mxu1 %v1218_v22 }
 0x17a   :  { %1428 = vmatmul.mubr.bf16.gmra.mrb[4].mxu1 %v1216_v19 }
 0x17b   :  { %1437 = vmatprep.mubr.bf16.mxu1 %v1217_v1 }
 0x182   :  { %1438 = vmatmul.mubr.bf16.gmra.mrb[8].mxu1 %v1215_v51 }
 0x212   :  { %v922_v53 = vpop.f32.mrb[12].mxu0 }
 0x213   :  { %v924_v56 = vpop.f32.mrb[13].mxu0 }
 0x214   :  { %v926_v58 = vpop.f32.mrb[14].mxu0 }
 0x215   :  { %v928_v59 = vpop.f32.mrb[15].mxu0 }
 0x21a   :  { %v932_v61 = vpop.f32.mrb[16].mxu0 }
 0x21b   :  { %v934_v62 = vpop.f32.mrb[17].mxu0 }
 0x21c   :  { %v936_v63 = vpop.f32.mrb[18].mxu0 }
 0x21d   :  { %v938_v0 = vpop.f32.mrb[19].mxu0 }
 0x222   :  { %v942_v2 = vpop.f32.mrb[20].mxu0 }
 0x223   :  { %v944_v3 = vpop.f32.mrb[21].mxu0 }
 0x224   :  { %v946_v4 = vpop.f32.mrb[22].mxu0 }
 0x225   :  { %v947_v60 = vpop.f32.mrb[23].mxu0 }
 0x245   :  { %v1419_v9 = vpop.f32.mrb[0].mxu1 }
 0x246   :  { %v1842_v49 = vadd.f32 %v1419_v9, %v922_v53  ;;  %v1421_v10 = vpop.f32.mrb[1].mxu1 }
 0x247   :  { %v1843_v11 = vadd.f32 %v1421_v10, %v924_v56  ;;  %v1423_v13 = vpop.f32.mrb[2].mxu1 }
 0x248   :  { %v1469_v51 = vmul.f32 %v1842_v49, %v1462_v7  ;;  %v1844_v14 = vadd.f32 %v1423_v13, %v926_v58  ;;  %v1425_v54 = vpop.f32.mrb[3].mxu1 }
 0x249   :  { %v1470_v15 = vmul.f32 %v1843_v11, %v2748_v5  ;;  %v1845_v16 = vadd.f32 %v1425_v54, %v928_v59 }
 0x24a   :  { %v2758_v1 = vadd.f32 %v2751_v8, %v1469_v51  ;;  %v1471_v17 = vmul.f32 %v1844_v14, %v1462_v7 }
 0x24b   :  { %v2761_v18 = vadd.f32 %v2754_v12, %v1470_v15  ;;  %v1472_v55 = vmul.f32 %v1845_v16, %v2748_v5 }
 0x24c   :  { %v1512_v19 = vmin.f32 %v2758_v1, 0.0  ;;  %v2766_v57 = vadd.f32 %v2751_v8, %v1471_v17  ;;  %vm1502_vm0 = vcmp.gt.f32.partialorder %v2758_v1, 0.0 }
 0x24d   :  { %v1513_v20 = vmin.f32 %v2761_v18, 0.0  ;;  %v2770_v21 = vadd.f32 %v2754_v12, %v1472_v55  ;;  %v1429_v22 = vpop.f32.mrb[4].mxu1  ;;  %vm1503_vm2 = vcmp.gt.f32.partialorder %v2761_v18, 0.0 }
 0x24e   :  { %v1522_v23 = vmul.f32 1.442695, %v1512_v19  ;;  %v1514_v25 = vmin.f32 %v2766_v57, 0.0  ;;  %v1846_v26 = vadd.f32 %v1429_v22, %v932_v61  ;;  %v1431_v28 = vpop.f32.mrb[5].mxu1  ;;  %vm1504_vm8 = vcmp.gt.f32.partialorder %v2766_v57, 0.0 }
 0x24f   :  { %v1524_v24 = vmul.f32 1.442695, %v1513_v20  ;;  %v1515_v29 = vmin.f32 %v2770_v21, 0.0  ;;  %v1847_v27 = vadd.f32 %v1431_v28, %v934_v62  ;;  %v1433_v31 = vpop.f32.mrb[6].mxu1  ;;  %vm1505_vm9 = vcmp.gt.f32.partialorder %v2770_v21, 0.0 }
 0x250   :  { %2095 = vpow2.f32 %v1522_v23  ;;  %v1526_v33 = vmul.f32 1.442695, %v1514_v25  ;;  %v1473_v34 = vmul.f32 %v1846_v26, %v1462_v7  ;;  %v1848_v35 = vadd.f32 %v1433_v31, %v936_v63  ;;  %v1435_v30 = vpop.f32.mrb[7].mxu1 }
 0x251   :  { %2097 = vpow2.f32 %v1524_v24  ;;  %v1528_v36 = vmul.f32 1.442695, %v1515_v29  ;;  %v1474_v37 = vmul.f32 %v1847_v27, %v2748_v5  ;;  %v1849_v38 = vadd.f32 %v1435_v30, %v938_v0 }
 0x252   :  { %2099 = vpow2.f32 %v1526_v33  ;;  %v2776_v32 = vadd.f32 %v2751_v8, %v1473_v34  ;;  %v1475_v39 = vmul.f32 %v1848_v35, %v1462_v7 }
 0x253   :  { %2101 = vpow2.f32 %v1528_v36  ;;  %v2779_v40 = vadd.f32 %v2754_v12, %v1474_v37  ;;  %v1476_v41 = vmul.f32 %v1849_v38, %v2748_v5 }
 0x254   :  { %v1516_v42 = vmin.f32 %v2776_v32, 0.0  ;;  %v2784_v43 = vadd.f32 %v2751_v8, %v1475_v39  ;;  %vm1506_vm10 = vcmp.gt.f32.partialorder %v2776_v32, 0.0 }
 0x255   :  { %v1517_v44 = vmin.f32 %v2779_v40, 0.0  ;;  %v2788_v45 = vadd.f32 %v2754_v12, %v1476_v41  ;;  %v1439_v47 = vpop.f32.mrb[8].mxu1  ;;  %vm1507_vm11 = vcmp.gt.f32.partialorder %v2779_v40, 0.0 }
 0x256   :  { %v1530_v48 = vmul.f32 1.442695, %v1516_v42  ;;  %v1518_v50 = vmin.f32 %v2784_v43, 0.0  ;;  %v1850_v52 = vadd.f32 %v1439_v47, %v942_v2  ;;  %v1441_v53 = vpop.f32.mrb[9].mxu1  ;;  %vm1508_vm12 = vcmp.gt.f32.partialorder %v2784_v43, 0.0 }
 0x257   :  { %v1532_v56 = vmul.f32 1.442695, %v1517_v44  ;;  %v1519_v58 = vmin.f32 %v2788_v45, 0.0  ;;  %v1851_v59 = vadd.f32 %v1441_v53, %v944_v3  ;;  %v1443_v61 = vpop.f32.mrb[10].mxu1  ;;  %vm1509_vm13 = vcmp.gt.f32.partialorder %v2788_v45, 0.0 }
 0x258   :  { %2103 = vpow2.f32 %v1530_v48  ;;  %v1534_v62 = vmul.f32 1.442695, %v1518_v50  ;;  %v1477_v63 = vmul.f32 %v1850_v52, %v1462_v7  ;;  %v1444_v0 = vpop.f32.mrb[11].mxu1 }
 0x259   :  { %2105 = vpow2.f32 %v1532_v56  ;;  %v1536_v4 = vmul.f32 1.442695, %v1519_v58  ;;  %v1478_v60 = vmul.f32 %v1851_v59, %v2748_v5 }
 0x25a   :  { %v2096_v6 = vpop.eup %2095  ;;  %2107 = vpow2.f32 %v1534_v62  ;;  %v1500_v46 = vadd.f32 %v2751_v8, %v1477_v63 }
 0x25b   :  { %v2098_v9 = vpop.eup %2097  ;;  %v1832_v2 = vadd.f32 -1.0, %v2096_v6  ;;  %2109 = vpow2.f32 %v1536_v4  ;;  %v1501_v49 = vadd.f32 %v2754_v12, %v1478_v60 }
 0x25c   :  { %v2100_v10 = vpop.eup %2099  ;;  %v1833_v3 = vadd.f32 -1.0, %v2098_v9  ;;  %v1520_v11 = vmin.f32 %v1500_v46, 0.0  ;;  %vm1510_vm14 = vcmp.gt.f32.partialorder %v1500_v46, 0.0 }
 0x25d   :  { %v2102_v7 = vpop.eup %2101  ;;  %v1552_v13 = vsel %vm1502_vm0, %v2758_v1, %v1832_v2  ;;  %v1834_v5 = vadd.f32 -1.0, %v2100_v10  ;;  %v1521_v51 = vmin.f32 %v1501_v49, 0.0  ;;  %vm1511_vm15 = vcmp.gt.f32.partialorder %v1501_v49, 0.0 }
 0x25e   :  { %v1553_v14 = vsel %vm1503_vm2, %v2761_v18, %v1833_v3  ;;  %v1835_v8 = vadd.f32 -1.0, %v2102_v7  ;;  %v1538_v54 = vmul.f32 1.442695, %v1520_v11 }
 0x25f   :  { %v1562_v15 = vmax.f32 %v1552_v13, %v1553_v14  ;;  %v1554_v12 = vsel %vm1504_vm8, %v2766_v57, %v1834_v5  ;;  %v1540_v16 = vmul.f32 1.442695, %v1521_v51 }
 0x260   :  { %v1555_v17 = vsel %vm1505_vm9, %v2770_v21, %v1835_v8  ;;  %2111 = vpow2.f32 %v1538_v54 }
 0x261   :  { %1567 = vst [vmem:[#allocation2] sm:$0xff] %v1562_v15  ;;  %v1563_v1 = vmax.f32 %v1554_v12, %v1555_v17  ;;  %2113 = vpow2.f32 %v1540_v16 }
 0x262   :  { %v2104_v55 = vpop.eup %2103 }
 0x263   :  { %v2106_v19 = vpop.eup %2105  ;;  %1568 = vst [vmem:[#allocation2 + $0x8] sm:$0xff] %v1563_v1  ;;  %v1836_v18 = vadd.f32 -1.0, %v2104_v55 }
 0x264   :  { %v2108_v20 = vpop.eup %2107  ;;  %v1837_v22 = vadd.f32 -1.0, %v2106_v19 }
 0x265   :  { %v2110_v23 = vpop.eup %2109  ;;  %v1556_v57 = vsel %vm1506_vm10, %v2776_v32, %v1836_v18  ;;  %v1838_v25 = vadd.f32 -1.0, %v2108_v20 }
 0x266   :  { %v1557_v21 = vsel %vm1507_vm11, %v2779_v40, %v1837_v22  ;;  %v1839_v26 = vadd.f32 -1.0, %v2110_v23 }
 0x267   :  { %v1564_v28 = vmax.f32 %v1556_v57, %v1557_v21  ;;  %v1558_v24 = vsel %vm1508_vm12, %v2784_v43, %v1838_v25 }
 0x268   :  { %v1559_v29 = vsel %vm1509_vm13, %v2788_v45, %v1839_v26 }
 0x269   :  { %1569 = vst [vmem:[#allocation2 + $0x10] sm:$0xff] %v1564_v28  ;;  %v1565_v27 = vmax.f32 %v1558_v24, %v1559_v29 }
 0x26a   :  { %v2112_v31 = vpop.eup %2111  ;;  %v1572_v33 = vld [vmem:[#allocation2] ss:$2 sm:$0xff]  ;;  %v1574_v34 = vld [vmem:[#allocation2 + $0x1] ss:$2 sm:$0xff] }
 0x26b   :  { %v2114_v35 = vpop.eup %2113  ;;  %v1575_v30 = vmax.f32 %v1572_v33, %v1574_v34  ;;  %1570 = vst [vmem:[#allocation2 + $0x18] sm:$0xff] %v1565_v27  ;;  %v1840_v36 = vadd.f32 -1.0, %v2112_v31 }
 0x26c   :  { %v1841_v37 = vadd.f32 -1.0, %v2114_v35 }
 0x26d   :  { %1576 = vst [vmem:[%s2821_s4] sm:$0xff] %v1575_v30  ;;  %v1560_v38 = vsel %vm1510_vm14, %v1500_v46, %v1840_v36 }
 0x26e   :  { %v1561_v32 = vsel %vm1511_vm15, %v1501_v49, %v1841_v37 }
 0x26f   :  { %v1566_v39 = vmax.f32 %v1560_v38, %v1561_v32 }
 0x271   :  { %1571 = vst [vmem:[#allocation2 + $0x20] sm:$0xf] %v1566_v39 }
 0x278   :  { %v1578_v40 = vld [vmem:[#allocation2 + $0x14] ss:$2 sm:$0xff]  ;;  %v1580_v41 = vld [vmem:[#allocation2 + $0x15] ss:$2 sm:$0xff] }
 0x279   :  { %v1581_v42 = vmax.f32 %v1578_v40, %v1580_v41 }
 0x27b   :  { %1582 = vst [vmem:[%s2821_s4 + $0x8] sm:$0xff] %v1581_v42 }

</bundles_post_ra>
